<compile_context>
chip_gen: v7x
topology: tpu7x:2x2x1
jax: 0.10.0
libtpu: 0.0.40
codegen_flags: <defaults>
</compile_context>

<pallas_src>
import functools
import math

import jax
import jax.numpy as jnp
from jax import lax
from jax.experimental import pallas as pl
from jax.experimental.pallas import tpu as pltpu


# Large finite negative used instead of -inf so that masked entries never
# produce NaN through exp(-inf - (-inf)).
_MASK_VALUE = -0.7 * float(jnp.finfo(jnp.float32).max)


def _vmem_limit_bytes():
    """Generation-aware scoped-VMEM limit (v7x: 64 MiB physical, v5e/v6e: 128 MiB)."""
    cap = 128 * 1024 * 1024
    try:
        info = pltpu.get_tpu_info()
        cap = int(getattr(info, "vmem_capacity_bytes", cap))
    except Exception:
        pass
    if cap <= 64 * 1024 * 1024:
        return 48 * 1024 * 1024      # leave headroom on v7x-class chips
    return 80 * 1024 * 1024          # v5e / v6e


_VMEM_LIMIT = _vmem_limit_bytes()


# ----------------------------------------------------------------------------
# Tiled Pallas matmul kernel (fused qkv projection and o_proj, bias-free)
# ----------------------------------------------------------------------------
def _matmul_kernel(x_ref, w_ref, o_ref, acc_ref):
    # K axis (grid axis 2) is the reduction axis and stays innermost.
    @pl.when(pl.program_id(2) == 0)
    def _():
        acc_ref[...] = jnp.zeros_like(acc_ref)

    acc_ref[...] += jnp.dot(
        x_ref[...], w_ref[...], preferred_element_type=jnp.float32
    )

    @pl.when(pl.program_id(2) == pl.num_programs(2) - 1)
    def _():
        o_ref[...] = acc_ref[...].astype(o_ref.dtype)


def _pick_tile(dim, candidates):
    """Largest candidate dividing dim; otherwise the full dim (always a valid block)."""
    for c in candidates:
        if c <= dim and dim % c == 0:
            return c
    return dim


def pallas_linear(x, w_t, *, out_dtype=None):
    """x: (M, K), w_t: (K, N) -> (M, N).  Equivalent to nn.Linear(bias=False)."""
    M, K = x.shape
    K2, N = w_t.shape
    assert K == K2
    out_dtype = out_dtype if out_dtype is not None else x.dtype

    # Large tiles amortize the ~0.35 us/step pipeline overhead and cut re-reads;
    # per-step footprint at (512,512,1024) bf16 with double buffering is ~6 MiB,
    # comfortably under the v7x VMEM cap.
    tm = _pick_tile(M, (512, 256, 128))
    tn = _pick_tile(N, (512, 256, 128))
    tk = _pick_tile(K, (1024, 512, 256, 128))

    grid = (M // tm, N // tn, K // tk)

    return pl.pallas_call(
        _matmul_kernel,
        out_shape=jax.ShapeDtypeStruct((M, N), out_dtype),
        grid_spec=pltpu.PrefetchScalarGridSpec(
            num_scalar_prefetch=0,
            grid=grid,
            in_specs=[
                pl.BlockSpec((tm, tk), lambda i, j, k: (i, k)),
                pl.BlockSpec((tk, tn), lambda i, j, k: (k, j)),
            ],
            out_specs=pl.BlockSpec((tm, tn), lambda i, j, k: (i, j)),
            scratch_shapes=[pltpu.VMEM((tm, tn), jnp.float32)],
        ),
        compiler_params=pltpu.CompilerParams(
            dimension_semantics=("parallel", "parallel", "arbitrary"),
            vmem_limit_bytes=_VMEM_LIMIT,
        ),
    )(x, w_t)


# ----------------------------------------------------------------------------
# Causal GQA flash-attention kernel
#   - flattened lower-triangular (qi, ki) schedule via scalar prefetch
#   - n_rep query heads packed per KV tile (K/V DMA'd once per group)
#   - online softmax, bf16 MXU, f32 stats
# ----------------------------------------------------------------------------
def _flash_kernel(qi_tab, ki_tab, q_ref, k_ref, v_ref, o_ref,
                  m_sc, l_sc, acc_sc, *, tq, tk, n_rep, head_dim):
    t = pl.program_id(1)
    qi = qi_tab[t]
    ki = ki_tab[t]
    # Last kv block intersecting the causal region for this query tile.
    diag = (qi * tq + tq - 1) // tk

    @pl.when(ki == 0)
    def _():
        m_sc[...] = jnp.full_like(m_sc, _MASK_VALUE)
        l_sc[...] = jnp.zeros_like(l_sc)
        acc_sc[...] = jnp.zeros_like(acc_sc)

    k = k_ref[0]        # (tk, D)          bf16
    v = v_ref[0]        # (tk, D)          bf16
    q_all = q_ref[0]    # (tq, n_rep * D)  bf16 - all query heads sharing this KV head

    def process(masked):
        if masked:
            q_idx = qi * tq + lax.broadcasted_iota(jnp.int32, (tq, tk), 0)
            k_idx = ki * tk + lax.broadcasted_iota(jnp.int32, (tq, tk), 1)
            keep = k_idx <= q_idx
        for r in range(n_rep):
            q_r = q_all[:, r * head_dim:(r + 1) * head_dim]
            # Contract over head_dim (no k.T materialization).  1/sqrt(D) is
            # already folded into the q projection weights.
            s = lax.dot_general(q_r, k, (((1,), (1,)), ((), ())),
                                preferred_element_type=jnp.float32)
            if masked:
                s = jnp.where(keep, s, _MASK_VALUE)
            m_prev = m_sc[r]
            m_new = jnp.maximum(m_prev, s.max(axis=-1, keepdims=True))
            alpha = jnp.exp(m_prev - m_new)
            p = jnp.exp(s - m_new)
            l_sc[r] = alpha * l_sc[r] + p.sum(axis=-1, keepdims=True)
            acc_sc[r] = alpha * acc_sc[r] + jnp.dot(
                p.astype(v.dtype), v, preferred_element_type=jnp.float32)
            m_sc[r] = m_new

    # Fast path for blocks entirely below the diagonal (no mask math at all).
    needs_mask = (ki * tk + tk - 1) > (qi * tq)

    @pl.when(needs_mask)
    def _():
        process(True)

    @pl.when(jnp.logical_not(needs_mask))
    def _():
        process(False)

    # Finalize at the diagonal (last) block of this query tile; single
    # lane-dense (tq, n_rep*D) store.
    @pl.when(ki == diag)
    def _():
        parts = [acc_sc[r] * pl.reciprocal(l_sc[r], approx=True)
                 for r in range(n_rep)]
        o_ref[0] = jnp.concatenate(parts, axis=-1).astype(o_ref.dtype)


def pallas_flash_attention(qkv, k, v, *, num_heads, num_kv_heads, head_dim,
                           tq=256, tk=128):
    """qkv: (B, S, (nH + 2*nKV)*D) fused projection output (Q read in place),
       k, v: (B*nKV, S, D).  Returns (B, S, nH*D) causal attention output."""
    B, S, _ = qkv.shape
    n_rep = num_heads // num_kv_heads
    BKV, Sk, Dk = k.shape
    assert BKV == B * num_kv_heads and Sk == S and Dk == head_dim

    tq = min(tq, S)
    tk = min(tk, S)
    assert S % tq == 0 and S % tk == 0, "ragged sequence lengths unsupported"
    group_w = n_rep * head_dim
    # Lane-dense Q/O blocks (>=128 wide).  TODO(synk): pack heads across KV
    # groups for configs where n_rep * head_dim < 128.
    assert group_w % 128 == 0, "n_rep * head_dim must be a multiple of 128"

    # Flattened lower-triangular (qi, ki) schedule - no dead causal steps.
    n_q = S // tq
    qi_list, ki_list = [], []
    for qi in range(n_q):
        diag = (qi * tq + tq - 1) // tk
        for ki in range(diag + 1):
            qi_list.append(qi)
            ki_list.append(ki)
    qi_tab = jnp.asarray(qi_list, dtype=jnp.int32)
    ki_tab = jnp.asarray(ki_list, dtype=jnp.int32)
    n_steps = len(qi_list)

    def q_map(bg, t, qi_t, ki_t):
        return (bg // num_kv_heads, qi_t[t], bg % num_kv_heads)

    def kv_map(bg, t, qi_t, ki_t):
        return (bg, ki_t[t], 0)

    def o_map(bg, t, qi_t, ki_t):
        return (bg // num_kv_heads, qi_t[t], bg % num_kv_heads)

    kernel = functools.partial(_flash_kernel, tq=tq, tk=tk,
                               n_rep=n_rep, head_dim=head_dim)

    return pl.pallas_call(
        kernel,
        out_shape=jax.ShapeDtypeStruct((B, S, num_heads * head_dim), qkv.dtype),
        grid_spec=pltpu.PrefetchScalarGridSpec(
            num_scalar_prefetch=2,
            grid=(B * num_kv_heads, n_steps),
            in_specs=[
                pl.BlockSpec((1, tq, group_w), q_map),     # Q (from fused qkv)
                pl.BlockSpec((1, tk, head_dim), kv_map),   # K
                pl.BlockSpec((1, tk, head_dim), kv_map),   # V
            ],
            out_specs=pl.BlockSpec((1, tq, group_w), o_map),
            scratch_shapes=[
                pltpu.VMEM((n_rep, tq, 1), jnp.float32),         # running max
                pltpu.VMEM((n_rep, tq, 1), jnp.float32),         # running denom
                pltpu.VMEM((n_rep, tq, head_dim), jnp.float32),  # output accumulator
            ],
        ),
        compiler_params=pltpu.CompilerParams(
            dimension_semantics=("parallel", "arbitrary"),
            vmem_limit_bytes=_VMEM_LIMIT,
        ),
    )(qi_tab, ki_tab, qkv, k, v)


# ----------------------------------------------------------------------------
# JambaFlashAttention2 forward (eval mode, no cache, no padding mask)
# ----------------------------------------------------------------------------
def jamba_flash_attention2_forward(
    hidden_states, wq, wk, wv, wo, *, num_heads, num_kv_heads
):
    B, S, H = hidden_states.shape
    assert H % num_heads == 0 and num_heads % num_kv_heads == 0
    head_dim = H // num_heads
    scale = 1.0 / math.sqrt(head_dim)

    cdt = jnp.bfloat16  # MXU compute dtype (matches FA2's reduced-precision path)

    # Weight prep: fuse q/k/v into one matmul and fold the softmax scale into wq.
    # (In a real deployment this is done once and cached, not per call.)
    w_qkv_t = jnp.concatenate(
        [(wq * scale).T, wk.T, wv.T], axis=1).astype(cdt)   # (H, (nH+2*nKV)*D)
    wo_t = wo.T.astype(cdt)

    x = hidden_states.reshape(B * S, H).astype(cdt)
    qkv = pallas_linear(x, w_qkv_t, out_dtype=cdt)          # (B*S, (nH+2*nKV)*D)
    qkv = qkv.reshape(B, S, -1)

    nq_cols = num_heads * head_dim
    nkv_cols = num_kv_heads * head_dim

    # Q stays inside the fused output (read in place by the attention kernel).
    # K/V get a small relayout to (B*nKV, S, D) so per-kv-head blocks are
    # lane-aligned even when head_dim < 128 (K/V are nKV/nH the size of Q).
    k = qkv[:, :, nq_cols:nq_cols + nkv_cols]
    v = qkv[:, :, nq_cols + nkv_cols:]
    k = k.reshape(B, S, num_kv_heads, head_dim).transpose(0, 2, 1, 3)
    k = k.reshape(B * num_kv_heads, S, head_dim)
    v = v.reshape(B, S, num_kv_heads, head_dim).transpose(0, 2, 1, 3)
    v = v.reshape(B * num_kv_heads, S, head_dim)

    attn = pallas_flash_attention(
        qkv, k, v, num_heads=num_heads, num_kv_heads=num_kv_heads,
        head_dim=head_dim,
    )  # (B, S, nH*D), already in output layout - no transposes needed.

    out = pallas_linear(attn.reshape(B * S, nq_cols), wo_t,
                        out_dtype=hidden_states.dtype)
    return out.reshape(B, S, H)


# ----------------------------------------------------------------------------
# Pure-JAX f32 reference (same math as the PyTorch module) for sanity checking
# ----------------------------------------------------------------------------
def _reference(hidden_states, wq, wk, wv, wo, *, num_heads, num_kv_heads):
    B, S, H = hidden_states.shape
    head_dim = H // num_heads
    n_rep = num_heads // num_kv_heads

    q = hidden_states @ wq.T
    k = hidden_states @ wk.T
    v = hidden_states @ wv.T
    q = q.reshape(B, S, num_heads, head_dim).transpose(0, 2, 1, 3)
    k = k.reshape(B, S, num_kv_heads, head_dim).transpose(0, 2, 1, 3)
    v = v.reshape(B, S, num_kv_heads, head_dim).transpose(0, 2, 1, 3)
    k = jnp.repeat(k, n_rep, axis=1)
    v = jnp.repeat(v, n_rep, axis=1)

    s = jnp.einsum("bhqd,bhkd->bhqk", q, k) / math.sqrt(head_dim)
    causal = jnp.tril(jnp.ones((S, S), dtype=bool))
    s = jnp.where(causal[None, None], s, -jnp.inf)
    p = jax.nn.softmax(s.astype(jnp.float32), axis=-1).astype(q.dtype)
    o = jnp.einsum("bhqk,bhkd->bhqd", p, v)
    o = o.transpose(0, 2, 1, 3).reshape(B, S, H)
    return o @ wo.T


# ----------------------------------------------------------------------------
if __name__ == "__main__":
    # Small Jamba-like config (head_dim=64, n_rep=2 -> 128-lane GQA Q/O blocks).
    B, S = 2, 256
    hidden_size = 256
    num_heads = 4
    num_kv_heads = 2
    head_dim = hidden_size // num_heads

    key = jax.random.PRNGKey(0)
    k0, k1, k2, k3, k4 = jax.random.split(key, 5)

    hidden_states = jax.random.normal(k0, (B, S, hidden_size), dtype=jnp.float32)

    # nn.Linear weight shape = (out_features, in_features)
    wq = 0.02 * jax.random.normal(k1, (num_heads * head_dim, hidden_size), jnp.float32)
    wk = 0.02 * jax.random.normal(k2, (num_kv_heads * head_dim, hidden_size), jnp.float32)
    wv = 0.02 * jax.random.normal(k3, (num_kv_heads * head_dim, hidden_size), jnp.float32)
    wo = 0.02 * jax.random.normal(k4, (hidden_size, hidden_size), jnp.float32)

    out = jamba_flash_attention2_forward(
        hidden_states, wq, wk, wv, wo,
        num_heads=num_heads, num_kv_heads=num_kv_heads,
    )
    out = jax.block_until_ready(out)

    ref = _reference(
        hidden_states, wq, wk, wv, wo,
        num_heads=num_heads, num_kv_heads=num_kv_heads,
    )
    assert out.shape == (B, S, hidden_size)
    max_err = float(jnp.max(jnp.abs(out.astype(jnp.float32) - ref)))
    # Accuracy contract: bf16 MXU path (FA2-style) vs f32 reference.
    assert jnp.allclose(out.astype(jnp.float32), ref, atol=3e-2, rtol=3e-2), (
        "mismatch vs reference: max abs err " + str(max_err)
    )

    # TODO(synk): attention_dropout (training), padding attention_mask,
    # sliding_window and HybridMambaAttentionDynamicCache updates are not
    # modeled; eval-mode prefill (no cache, causal only).
    print("KERNEL_OK")
</pallas_src>

<mosaic_0001>
module attributes {stable_mosaic.version = 11 : i64} {
  func.func @_matmul_kernel(%arg0: i32, %arg1: i32, %arg2: i32, %arg3: memref<512x256xbf16, #tpu.memory_space<vmem>>, %arg4: memref<256x512xbf16, #tpu.memory_space<vmem>>, %arg5: memref<512x512xbf16, #tpu.memory_space<vmem>>, %arg6: memref<512x512xf32, #tpu.memory_space<vmem>>) attributes {dimension_semantics = [#tpu.dimension_semantics<parallel>, #tpu.dimension_semantics<parallel>, #tpu.dimension_semantics<arbitrary>], iteration_bounds = array<i64: 1, 1, 1>, scalar_prefetch = 0 : i64, scratch_operands = 1 : i64, tpu.core_type = #tpu.core_type<tc>, window_params = [{transform_indices = @transform_0, window_bounds = array<i64: 512, 256>}, {transform_indices = @transform_1, window_bounds = array<i64: 256, 512>}, {transform_indices = @transform_2, window_bounds = array<i64: 512, 512>}]} {
    %c0_i32 = arith.constant 0 : i32
    %0 = arith.cmpi eq, %arg2, %c0_i32 : i32
    %1 = arith.extui %0 : i1 to i32
    %c0_i32_0 = arith.constant 0 : i32
    %2 = arith.cmpi ne, %1, %c0_i32_0 : i32
    scf.if %2 {
      %cst_10 = arith.constant 0.000000e+00 : f32
      %12 = vector.broadcast %cst_10 : f32 to vector<512x512xf32>
      %c0_11 = arith.constant 0 : index
      %c0_12 = arith.constant 0 : index
      %13 = vector.load %arg6[%c0_11, %c0_12] : memref<512x512xf32, #tpu.memory_space<vmem>>, vector<512x512xf32>
      tpu.vector_store %arg6[%c0_11, %c0_12], %12 {strides = array<i32>} : memref<512x512xf32, #tpu.memory_space<vmem>>, vector<512x512xf32>,
    } else {
    }
    %c0 = arith.constant 0 : index
    %c0_1 = arith.constant 0 : index
    %3 = vector.load %arg6[%c0, %c0_1] : memref<512x512xf32, #tpu.memory_space<vmem>>, vector<512x512xf32>
    %c0_2 = arith.constant 0 : index
    %c0_3 = arith.constant 0 : index
    %4 = vector.load %arg3[%c0_2, %c0_3] : memref<512x256xbf16, #tpu.memory_space<vmem>>, vector<512x256xbf16>
    %c0_4 = arith.constant 0 : index
    %c0_5 = arith.constant 0 : index
    %5 = vector.load %arg4[%c0_4, %c0_5] : memref<256x512xbf16, #tpu.memory_space<vmem>>, vector<256x512xbf16>
    %cst = arith.constant dense<0.000000e+00> : vector<512x512xf32>
    %6 = tpu.matmul %4, %5, %cst {dimension_numbers = #tpu.dot_dimension_numbers<[1], [0], [0], [1], [0, 0, 1, 1], [], []>} : vector<512x256xbf16>, vector<256x512xbf16>, vector<512x512xf32> -> vector<512x512xf32>
    %7 = arith.addf %3, %6 : vector<512x512xf32>
    %c0_6 = arith.constant 0 : index
    %c0_7 = arith.constant 0 : index
    %8 = vector.load %arg6[%c0_6, %c0_7] : memref<512x512xf32, #tpu.memory_space<vmem>>, vector<512x512xf32>
    tpu.vector_store %arg6[%c0_6, %c0_7], %7 {strides = array<i32>} : memref<512x512xf32, #tpu.memory_space<vmem>>, vector<512x512xf32>,
    %c0_i32_8 = arith.constant 0 : i32
    %9 = arith.cmpi eq, %arg2, %c0_i32_8 : i32
    %10 = arith.extui %9 : i1 to i32
    %c0_i32_9 = arith.constant 0 : i32
    %11 = arith.cmpi ne, %10, %c0_i32_9 : i32
    scf.if %11 {
      %c0_10 = arith.constant 0 : index
      %c0_11 = arith.constant 0 : index
      %12 = vector.load %arg6[%c0_10, %c0_11] : memref<512x512xf32, #tpu.memory_space<vmem>>, vector<512x512xf32>
      %13 = arith.truncf %12 : vector<512x512xf32> to vector<512x512xbf16>
      %c0_12 = arith.constant 0 : index
      %c0_13 = arith.constant 0 : index
      %14 = vector.load %arg5[%c0_12, %c0_13] : memref<512x512xbf16, #tpu.memory_space<vmem>>, vector<512x512xbf16>
      tpu.vector_store %arg5[%c0_12, %c0_13], %13 {strides = array<i32>} : memref<512x512xbf16, #tpu.memory_space<vmem>>, vector<512x512xbf16>,
    } else {
    }
    return
  }
  func.func @transform_0(%arg0: i32, %arg1: i32, %arg2: i32) -> (i32, i32) {
    %c0_i32 = arith.constant 0 : i32
    return %arg0, %arg2 : i32, i32
  }
  func.func @transform_1(%arg0: i32, %arg1: i32, %arg2: i32) -> (i32, i32) {
    %c0_i32 = arith.constant 0 : i32
    return %arg2, %arg1 : i32, i32
  }
  func.func @transform_2(%arg0: i32, %arg1: i32, %arg2: i32) -> (i32, i32) {
    %c0_i32 = arith.constant 0 : i32
    return %arg0, %arg1 : i32, i32
  }
}

</mosaic_0001>

<bundles_post_ra>
// kernel: tpu_custom_call.1
= control target key start
LH: loop header
LB: loop body
LE: loop exit
PB: predicated region body
PF: predicated region fallthrough
CT: control target
= control target key end

     0   :  { %7 = vsyncpa [#allocation4], 0  ;;  %s4434_s0 = inlined_call_operand.hbm [shape: bf16[512,256], index: 0, kind: input, shape index: {}]   ;;  %s4435_s1 = inlined_call_operand.hbm [shape: bf16[256,512], index: 1, kind: input, shape index: {}]   ;;  %s4436_s2 = inlined_call_operand.hbm [shape: bf16[512,512], index: 2, kind: output, shape index: {}]  }
   0x1   :  { %8 = vsyncpa [#allocation7], 0 }
   0x2   :  { %9 = vsyncpa [#allocation5], 0  ;;  %s4370_s9 = smov [#allocation3]   ;;  %s4298_s13 = scalar_lea.hbm %s4434_s0, 8192 }
   0x3   :  { %s15_s10 = sshll.u32 %s4370_s9, 4  ;;  %p4299_p0 = scmp.ne.s32.totalorder %s4434_s0, %s4298_s13  ;;  %s16_s10 = int_to_ptr.vmem [resolvable:$true] %s15_s10 }
   0x4   :  { %p4302_p1 = scmp.lt.u32.totalorder %s4298_s13, %s4434_s0 }
   0x6   :  { %p4304_p2 = pnand %p4302_p1, %p4299_p0 }
   0x8   :  { %4307 = shalt.err (!%p4304_p2)
}
   0x9   :  { %s4308_s18 = scalar_lea.vmem %s16_s10, 8192  ;;  %p4313_p4 = scmp.lt.s32.totalorder %s16_s10, %s16_s10 }
   0xa   :  { %p4309_p3 = scmp.ne.s32.totalorder %s16_s10, %s4308_s18  ;;  %p4314_p5 = scmp.lt.s32.totalorder %s4308_s18, %s4308_s18 }
   0xc   :  { %p4315_p6 = por %p4314_p5, %p4313_p4 }
   0xe   :  { %p4316_p7 = pnand %p4315_p6, %p4309_p3 }
  0x10   :  { %4319 = shalt.err (!%p4316_p7)
}
  0x11   :  { %s4371_s19 = smov 128   ;;  %s4372_s20 = smov 8  }
  0x12   :  { %21 = dma.hbm_to_vmem [thread:$0]  %s4434_s0, 8192, %s16_s10, [#allocation4], %s4371_s19, %s4371_s19, %s4372_s20  }
  0x13   :  { %s4373_s23 = smov [#allocation6]   ;;  %s4320_s27 = scalar_lea.hbm %s4435_s1, 8192 }
  0x14   :  { %s27_s24 = sshll.u32 %s4373_s23, 4  ;;  %p4321_p8 = scmp.ne.s32.totalorder %s4435_s1, %s4320_s27  ;;  %s28_s24 = int_to_ptr.vmem [resolvable:$true] %s27_s24 }
  0x15   :  { %p4324_p9 = scmp.lt.u32.totalorder %s4320_s27, %s4435_s1 }
  0x17   :  { %p4326_p10 = pnand %p4324_p9, %p4321_p8 }
  0x19   :  { %4329 = shalt.err (!%p4326_p10)
}
  0x1a   :  { %s4330_s4 = scalar_lea.vmem %s28_s24, 8192  ;;  %p4335_p12 = scmp.lt.s32.totalorder %s28_s24, %s28_s24 }
  0x1b   :  { %p4331_p11 = scmp.ne.s32.totalorder %s28_s24, %s4330_s4  ;;  %p4336_p13 = scmp.lt.s32.totalorder %s4330_s4, %s4330_s4 }
  0x1d   :  { %p4337_p0 = por %p4336_p13, %p4335_p12 }
  0x1f   :  { %p4338_p1 = pnand %p4337_p0, %p4331_p11 }
  0x21   :  { %4341 = shalt.err (!%p4338_p1)
}
  0x22   :  { %s4374_s0 = smov 256   ;;  %s4375_s5 = smov 16  }
  0x23   :  { %33 = dma.hbm_to_vmem [thread:$0]  %s4435_s1, 8192, %s28_s24, [#allocation7], %s4374_s0, %s4374_s0, %s4375_s5  }
  0x24   :  { %4364 = dma.done.wait [#allocation4], 8192  }
  0x25   :  { %4365 = vsyncadd [#allocation4], 4294959104 }
  0x26   :  { %4366 = dma.done.wait [#allocation7], 8192  }
  0x27   :  { %4367 = vsyncadd [#allocation7], 4294959104  ;;  %v4106_v0 = vld [vmem:[#allocation6 + $0x4] ss:$16 sps:$4 sm:$0xff]   ;;  %v4108_v1 = vld [vmem:[#allocation6 + $0xc] ss:$16 sps:$4 sm:$0xff]  }
  0x28   :  { %1324 = vmatprep.subr.bf16.mxu0 %v4106_v0  ;;  %v4110_v2 = vld [vmem:[#allocation6] ss:$16 sps:$4 sm:$0xff]   ;;  %v4111_v3 = vld [vmem:[#allocation6 + $0x8] ss:$16 sps:$4 sm:$0xff]   ;;  %1677 = vmatprep.subr.bf16.mxu1 %v4108_v1  ;;  %v4112_v4 = vld [vmem:[#allocation6 + $0x24] ss:$16 sps:$4 sm:$0xff]  }
  0x29   :  { %1325 = vmatpush1.bf16.msra.mxu0 %v4110_v2  ;;  %1678 = vmatpush1.bf16.msra.mxu1 %v4111_v3  ;;  %v4114_v5 = vld [vmem:[#allocation6 + $0x2c] ss:$16 sps:$4 sm:$0xff]   ;;  %v4116_v6 = vld [vmem:[#allocation6 + $0x20] ss:$16 sps:$4 sm:$0xff]   ;;  %v4117_v7 = vld [vmem:[#allocation6 + $0x28] ss:$16 sps:$4 sm:$0xff]  }
  0x2a   :  { %1326 = vmatprep.subr.bf16.mxu0 %v4112_v4  ;;  %1679 = vmatprep.subr.bf16.mxu1 %v4114_v5  ;;  %v4118_v8 = vld [vmem:[#allocation6 + $0x44] ss:$16 sps:$4 sm:$0xff]   ;;  %v4120_v9 = vld [vmem:[#allocation6 + $0x4c] ss:$16 sps:$4 sm:$0xff]   ;;  %v4122_v10 = vld [vmem:[#allocation6 + $0x40] ss:$16 sps:$4 sm:$0xff]  }
  0x2b   :  { %v4123_v11 = vld [vmem:[#allocation6 + $0x48] ss:$16 sps:$4 sm:$0xff]   ;;  %v4124_v12 = vld [vmem:[#allocation6 + $0x64] ss:$16 sps:$4 sm:$0xff]   ;;  %v4126_v13 = vld [vmem:[#allocation6 + $0x6c] ss:$16 sps:$4 sm:$0xff]  }
  0x2c   :  { %v4128_v14 = vld [vmem:[#allocation6 + $0x60] ss:$16 sps:$4 sm:$0xff]   ;;  %v4129_v15 = vld [vmem:[#allocation6 + $0x68] ss:$16 sps:$4 sm:$0xff]   ;;  %v4130_v16 = vld [vmem:[#allocation6 + $0x84] ss:$16 sps:$4 sm:$0xff]  }
  0x2d   :  { %1327 = vmatpush1.bf16.msra.mxu0 %v4116_v6  ;;  %1680 = vmatpush1.bf16.msra.mxu1 %v4117_v7  ;;  %v4132_v17 = vld [vmem:[#allocation6 + $0x8c] ss:$16 sps:$4 sm:$0xff]   ;;  %v4134_v18 = vld [vmem:[#allocation6 + $0x80] ss:$16 sps:$4 sm:$0xff]   ;;  %v4135_v19 = vld [vmem:[#allocation6 + $0x88] ss:$16 sps:$4 sm:$0xff]  }
  0x2e   :  { %1328 = vmatprep.subr.bf16.mxu0 %v4118_v8  ;;  %1681 = vmatprep.subr.bf16.mxu1 %v4120_v9  ;;  %v4136_v20 = vld [vmem:[#allocation6 + $0xa4] ss:$16 sps:$4 sm:$0xff]   ;;  %v4138_v21 = vld [vmem:[#allocation6 + $0xac] ss:$16 sps:$4 sm:$0xff]   ;;  %v4140_v22 = vld [vmem:[#allocation6 + $0xa0] ss:$16 sps:$4 sm:$0xff]  }
  0x2f   :  { %v4141_v23 = vld [vmem:[#allocation6 + $0xa8] ss:$16 sps:$4 sm:$0xff]   ;;  %v4142_v24 = vld [vmem:[#allocation6 + $0xc4] ss:$16 sps:$4 sm:$0xff]   ;;  %v4144_v25 = vld [vmem:[#allocation6 + $0xcc] ss:$16 sps:$4 sm:$0xff]  }
  0x30   :  { %v4146_v26 = vld [vmem:[#allocation6 + $0xc0] ss:$16 sps:$4 sm:$0xff]   ;;  %v4147_v27 = vld [vmem:[#allocation6 + $0xc8] ss:$16 sps:$4 sm:$0xff]   ;;  %v4148_v28 = vld [vmem:[#allocation6 + $0xe4] ss:$16 sps:$4 sm:$0xff]  }
  0x31   :  { %1329 = vmatpush1.bf16.msra.mxu0 %v4122_v10  ;;  %1682 = vmatpush1.bf16.msra.mxu1 %v4123_v11  ;;  %v4150_v29 = vld [vmem:[#allocation6 + $0xec] ss:$16 sps:$4 sm:$0xff]   ;;  %v4152_v30 = vld [vmem:[#allocation6 + $0xe0] ss:$16 sps:$4 sm:$0xff]   ;;  %v4153_v31 = vld [vmem:[#allocation6 + $0xe8] ss:$16 sps:$4 sm:$0xff]  }
  0x32   :  { %1330 = vmatprep.subr.bf16.mxu0 %v4124_v12  ;;  %1683 = vmatprep.subr.bf16.mxu1 %v4126_v13  ;;  %v4154_v32 = vld [vmem:[#allocation6 + $0x104] ss:$16 sps:$4 sm:$0xff]   ;;  %v4156_v33 = vld [vmem:[#allocation6 + $0x10c] ss:$16 sps:$4 sm:$0xff]   ;;  %v4158_v34 = vld [vmem:[#allocation6 + $0x100] ss:$16 sps:$4 sm:$0xff]  }
  0x33   :  { %v4159_v35 = vld [vmem:[#allocation6 + $0x108] ss:$16 sps:$4 sm:$0xff]   ;;  %v4160_v36 = vld [vmem:[#allocation6 + $0x124] ss:$16 sps:$4 sm:$0xff]   ;;  %v4162_v37 = vld [vmem:[#allocation6 + $0x12c] ss:$16 sps:$4 sm:$0xff]  }
  0x34   :  { %v4164_v38 = vld [vmem:[#allocation6 + $0x120] ss:$16 sps:$4 sm:$0xff]   ;;  %v4165_v39 = vld [vmem:[#allocation6 + $0x128] ss:$16 sps:$4 sm:$0xff]   ;;  %v4166_v40 = vld [vmem:[#allocation6 + $0x144] ss:$16 sps:$4 sm:$0xff]  }
  0x35   :  { %1331 = vmatpush1.bf16.msra.mxu0 %v4128_v14  ;;  %1684 = vmatpush1.bf16.msra.mxu1 %v4129_v15  ;;  %v4168_v41 = vld [vmem:[#allocation6 + $0x14c] ss:$16 sps:$4 sm:$0xff]   ;;  %v4170_v42 = vld [vmem:[#allocation6 + $0x140] ss:$16 sps:$4 sm:$0xff]   ;;  %v4171_v43 = vld [vmem:[#allocation6 + $0x148] ss:$16 sps:$4 sm:$0xff]  }
  0x36   :  { %1332 = vmatprep.subr.bf16.mxu0 %v4130_v16  ;;  %1685 = vmatprep.subr.bf16.mxu1 %v4132_v17  ;;  %v4172_v44 = vld [vmem:[#allocation6 + $0x164] ss:$16 sps:$4 sm:$0xff]   ;;  %v4174_v45 = vld [vmem:[#allocation6 + $0x16c] ss:$16 sps:$4 sm:$0xff]   ;;  %v4176_v46 = vld [vmem:[#allocation6 + $0x160] ss:$16 sps:$4 sm:$0xff]  }
  0x37   :  { %v4177_v47 = vld [vmem:[#allocation6 + $0x168] ss:$16 sps:$4 sm:$0xff]   ;;  %v4204_v48 = vld [vmem:[#allocation3 + $0x4] ss:$8 sps:$4 sm:$0xff]   ;;  %v4182_v51 = vld [vmem:[#allocation6 + $0x180] ss:$16 sps:$4 sm:$0xff]  }
  0x38   :  { %v4178_v49 = vld [vmem:[#allocation6 + $0x184] ss:$16 sps:$4 sm:$0xff]   ;;  %v4180_v50 = vld [vmem:[#allocation6 + $0x18c] ss:$16 sps:$4 sm:$0xff]   ;;  %1356 = vmatprep.mubr.bf16.mxu0 %v4204_v48  ;;  %1709 = vmatprep.mubr.bf16.mxu1 %v4204_v48  ;;  %v4183_v52 = vld [vmem:[#allocation6 + $0x188] ss:$16 sps:$4 sm:$0xff]  }
  0x39   :  { %1333 = vmatpush1.bf16.msra.mxu0 %v4134_v18  ;;  %1686 = vmatpush1.bf16.msra.mxu1 %v4135_v19  ;;  %v4184_v53 = vld [vmem:[#allocation6 + $0x1a4] ss:$16 sps:$4 sm:$0xff]   ;;  %v4186_v54 = vld [vmem:[#allocation6 + $0x1ac] ss:$16 sps:$4 sm:$0xff]   ;;  %v4188_v55 = vld [vmem:[#allocation6 + $0x1a0] ss:$16 sps:$4 sm:$0xff]  }
  0x3a   :  { %1334 = vmatprep.subr.bf16.mxu0 %v4136_v20  ;;  %1687 = vmatprep.subr.bf16.mxu1 %v4138_v21  ;;  %v4189_v56 = vld [vmem:[#allocation6 + $0x1a8] ss:$16 sps:$4 sm:$0xff]   ;;  %v4190_v57 = vld [vmem:[#allocation6 + $0x1c4] ss:$16 sps:$4 sm:$0xff]   ;;  %v4192_v58 = vld [vmem:[#allocation6 + $0x1cc] ss:$16 sps:$4 sm:$0xff]  }
  0x3b   :  { %v4194_v59 = vld [vmem:[#allocation6 + $0x1c0] ss:$16 sps:$4 sm:$0xff]   ;;  %v4195_v60 = vld [vmem:[#allocation6 + $0x1c8] ss:$16 sps:$4 sm:$0xff]   ;;  %v4196_v61 = vld [vmem:[#allocation6 + $0x1e4] ss:$16 sps:$4 sm:$0xff]  }
  0x3c   :  { %v4198_v62 = vld [vmem:[#allocation6 + $0x1ec] ss:$16 sps:$4 sm:$0xff]   ;;  %v4200_v63 = vld [vmem:[#allocation6 + $0x1e0] ss:$16 sps:$4 sm:$0xff]   ;;  %v4201_v0 = vld [vmem:[#allocation6 + $0x1e8] ss:$16 sps:$4 sm:$0xff]  }
  0x3d   :  { %1335 = vmatpush1.bf16.msra.mxu0 %v4140_v22  ;;  %1688 = vmatpush1.bf16.msra.mxu1 %v4141_v23  ;;  %v4202_v1 = vld [vmem:[#allocation3] ss:$8 sps:$4 sm:$0xff]   ;;  %v4205_v2 = vld [vmem:[#allocation3 + $0x14] ss:$8 sps:$4 sm:$0xff]   ;;  %v4207_v3 = vld [vmem:[#allocation3 + $0x10] ss:$8 sps:$4 sm:$0xff]  }
  0x3e   :  { %1336 = vmatprep.subr.bf16.mxu0 %v4142_v24  ;;  %1689 = vmatprep.subr.bf16.mxu1 %v4144_v25  ;;  %v4208_v4 = vld [vmem:[#allocation3 + $0x24] ss:$8 sps:$4 sm:$0xff]   ;;  %v4210_v5 = vld [vmem:[#allocation3 + $0x20] ss:$8 sps:$4 sm:$0xff]   ;;  %v4211_v6 = vld [vmem:[#allocation3 + $0x34] ss:$8 sps:$4 sm:$0xff]  }
  0x3f   :  { %v4213_v7 = vld [vmem:[#allocation3 + $0x30] ss:$8 sps:$4 sm:$0xff]   ;;  %v4214_v8 = vld [vmem:[#allocation3 + $0x44] ss:$8 sps:$4 sm:$0xff]   ;;  %v4216_v9 = vld [vmem:[#allocation3 + $0x40] ss:$8 sps:$4 sm:$0xff]  }
  0x40   :  { %v4217_v10 = vld [vmem:[#allocation3 + $0x54] ss:$8 sps:$4 sm:$0xff]   ;;  %v4219_v11 = vld [vmem:[#allocation3 + $0x50] ss:$8 sps:$4 sm:$0xff]   ;;  %v4220_v12 = vld [vmem:[#allocation3 + $0x64] ss:$8 sps:$4 sm:$0xff]  }
  0x41   :  { %1337 = vmatpush1.bf16.msra.mxu0 %v4146_v26  ;;  %1690 = vmatpush1.bf16.msra.mxu1 %v4147_v27  ;;  %v4222_v13 = vld [vmem:[#allocation3 + $0x60] ss:$8 sps:$4 sm:$0xff]   ;;  %v4223_v14 = vld [vmem:[#allocation3 + $0x74] ss:$8 sps:$4 sm:$0xff]   ;;  %v4225_v15 = vld [vmem:[#allocation3 + $0x70] ss:$8 sps:$4 sm:$0xff]  }
  0x42   :  { %1338 = vmatprep.subr.bf16.mxu0 %v4148_v28  ;;  %1691 = vmatprep.subr.bf16.mxu1 %v4150_v29  ;;  %v4226_v16 = vld [vmem:[#allocation3 + $0x84] ss:$8 sps:$4 sm:$0xff]   ;;  %v4228_v17 = vld [vmem:[#allocation3 + $0x80] ss:$8 sps:$4 sm:$0xff]   ;;  %v4229_v18 = vld [vmem:[#allocation3 + $0x94] ss:$8 sps:$4 sm:$0xff]  }
  0x43   :  { %v4231_v19 = vld [vmem:[#allocation3 + $0x90] ss:$8 sps:$4 sm:$0xff]   ;;  %v4232_v20 = vld [vmem:[#allocation3 + $0xa4] ss:$8 sps:$4 sm:$0xff]   ;;  %v4234_v21 = vld [vmem:[#allocation3 + $0xa0] ss:$8 sps:$4 sm:$0xff]  }
  0x44   :  { %v4235_v22 = vld [vmem:[#allocation3 + $0xb4] ss:$8 sps:$4 sm:$0xff]   ;;  %v4237_v23 = vld [vmem:[#allocation3 + $0xb0] ss:$8 sps:$4 sm:$0xff]   ;;  %v4238_v24 = vld [vmem:[#allocation3 + $0xc4] ss:$8 sps:$4 sm:$0xff]  }
  0x45   :  { %1339 = vmatpush1.bf16.msra.mxu0 %v4152_v30  ;;  %1692 = vmatpush1.bf16.msra.mxu1 %v4153_v31  ;;  %v4240_v25 = vld [vmem:[#allocation3 + $0xc0] ss:$8 sps:$4 sm:$0xff]   ;;  %v4241_v26 = vld [vmem:[#allocation3 + $0xd4] ss:$8 sps:$4 sm:$0xff]   ;;  %v4243_v27 = vld [vmem:[#allocation3 + $0xd0] ss:$8 sps:$4 sm:$0xff]  }
  0x46   :  { %1340 = vmatprep.subr.bf16.mxu0 %v4154_v32  ;;  %1693 = vmatprep.subr.bf16.mxu1 %v4156_v33  ;;  %v4244_v28 = vld [vmem:[#allocation3 + $0xe4] ss:$8 sps:$4 sm:$0xff]   ;;  %v4246_v29 = vld [vmem:[#allocation3 + $0xe0] ss:$8 sps:$4 sm:$0xff]   ;;  %v4247_v30 = vld [vmem:[#allocation3 + $0xf4] ss:$8 sps:$4 sm:$0xff]  }
  0x47   :  { %v4249_v31 = vld [vmem:[#allocation3 + $0xf0] ss:$8 sps:$4 sm:$0xff]   ;;  %v4250_v32 = vld [vmem:[#allocation3 + $0x104] ss:$8 sps:$4 sm:$0xff]   ;;  %v4252_v33 = vld [vmem:[#allocation3 + $0x100] ss:$8 sps:$4 sm:$0xff]  }
  0x48   :  { %v4274_v48 = vld [vmem:[#allocation3 + $0x184] ss:$8 sps:$4 sm:$0xff]   ;;  %s4376_s1 = smov [#allocation8]  }
  0x49   :  { %1341 = vmatpush1.bf16.msra.mxu0 %v4158_v34  ;;  %1694 = vmatpush1.bf16.msra.mxu1 %v4159_v35  ;;  %v4253_v34 = vld [vmem:[#allocation3 + $0x114] ss:$8 sps:$4 sm:$0xff]   ;;  %v4255_v35 = vld [vmem:[#allocation3 + $0x110] ss:$8 sps:$4 sm:$0xff]   ;;  %s3702_s8 = sshll.u32 %s4376_s1, 4  ;;  %s3703_s8 = int_to_ptr.vmem [resolvable:$true] %s3702_s8 }
  0x4a   :  { %1342 = vmatprep.subr.bf16.mxu0 %v4160_v36  ;;  %1695 = vmatprep.subr.bf16.mxu1 %v4162_v37  ;;  %v4256_v36 = vld [vmem:[#allocation3 + $0x124] ss:$8 sps:$4 sm:$0xff]   ;;  %v4258_v37 = vld [vmem:[#allocation3 + $0x120] ss:$8 sps:$4 sm:$0xff]   ;;  %s4342_s9 = scalar_lea.vmem %s3703_s8, 16384  ;;  %p4347_p3 = scmp.lt.s32.totalorder %s3703_s8, %s3703_s8 }
  0x4b   :  { %p4343_p2 = scmp.ne.s32.totalorder %s3703_s8, %s4342_s9  ;;  %p4348_p4 = scmp.lt.s32.totalorder %s4342_s9, %s4342_s9 }
  0x4d   :  { %1343 = vmatpush1.bf16.msra.mxu0 %v4164_v38  ;;  %1696 = vmatpush1.bf16.msra.mxu1 %v4165_v39  ;;  %v4259_v38 = vld [vmem:[#allocation3 + $0x134] ss:$8 sps:$4 sm:$0xff]   ;;  %v4261_v39 = vld [vmem:[#allocation3 + $0x130] ss:$8 sps:$4 sm:$0xff]   ;;  %p4349_p5 = por %p4348_p4, %p4347_p3 }
  0x4e   :  { %1344 = vmatprep.subr.bf16.mxu0 %v4166_v40  ;;  %1697 = vmatprep.subr.bf16.mxu1 %v4168_v41  ;;  %v4262_v40 = vld [vmem:[#allocation3 + $0x144] ss:$8 sps:$4 sm:$0xff]   ;;  %v4264_v41 = vld [vmem:[#allocation3 + $0x140] ss:$8 sps:$4 sm:$0xff]  }
  0x4f   :  { %p4350_p6 = pnand %p4349_p5, %p4343_p2 }
  0x51   :  { %1345 = vmatpush1.bf16.msra.mxu0 %v4170_v42  ;;  %1698 = vmatpush1.bf16.msra.mxu1 %v4171_v43  ;;  %v4265_v42 = vld [vmem:[#allocation3 + $0x154] ss:$8 sps:$4 sm:$0xff]   ;;  %v4267_v43 = vld [vmem:[#allocation3 + $0x150] ss:$8 sps:$4 sm:$0xff]  }
  0x52   :  { %1346 = vmatprep.subr.bf16.mxu0 %v4172_v44  ;;  %1699 = vmatprep.subr.bf16.mxu1 %v4174_v45  ;;  %v4268_v44 = vld [vmem:[#allocation3 + $0x164] ss:$8 sps:$4 sm:$0xff]   ;;  %v4270_v45 = vld [vmem:[#allocation3 + $0x160] ss:$8 sps:$4 sm:$0xff]  }
  0x55   :  { %1347 = vmatpush1.bf16.msra.mxu0 %v4176_v46  ;;  %1700 = vmatpush1.bf16.msra.mxu1 %v4177_v47  ;;  %v4271_v46 = vld [vmem:[#allocation3 + $0x174] ss:$8 sps:$4 sm:$0xff]   ;;  %v4273_v47 = vld [vmem:[#allocation3 + $0x170] ss:$8 sps:$4 sm:$0xff]  }
  0x56   :  { %1348 = vmatprep.subr.bf16.mxu0 %v4178_v49  ;;  %1701 = vmatprep.subr.bf16.mxu1 %v4180_v50  ;;  %v4276_v49 = vld [vmem:[#allocation3 + $0x180] ss:$8 sps:$4 sm:$0xff]   ;;  %v4277_v50 = vld [vmem:[#allocation3 + $0x194] ss:$8 sps:$4 sm:$0xff]  }
  0x59   :  { %1349 = vmatpush1.bf16.msra.mxu0 %v4182_v51  ;;  %1702 = vmatpush1.bf16.msra.mxu1 %v4183_v52  ;;  %v4279_v51 = vld [vmem:[#allocation3 + $0x190] ss:$8 sps:$4 sm:$0xff]   ;;  %v4280_v52 = vld [vmem:[#allocation3 + $0x1a4] ss:$8 sps:$4 sm:$0xff]  }
  0x5a   :  { %1350 = vmatprep.subr.bf16.mxu0 %v4184_v53  ;;  %1703 = vmatprep.subr.bf16.mxu1 %v4186_v54  ;;  %v4282_v53 = vld [vmem:[#allocation3 + $0x1a0] ss:$8 sps:$4 sm:$0xff]   ;;  %v4283_v54 = vld [vmem:[#allocation3 + $0x1b4] ss:$8 sps:$4 sm:$0xff]  }
  0x5d   :  { %1351 = vmatpush1.bf16.msra.mxu0 %v4188_v55  ;;  %1704 = vmatpush1.bf16.msra.mxu1 %v4189_v56 }
  0x5e   :  { %1352 = vmatprep.subr.bf16.mxu0 %v4190_v57  ;;  %1705 = vmatprep.subr.bf16.mxu1 %v4192_v58 }
  0x61   :  { %1353 = vmatpush1.bf16.msra.mxu0 %v4194_v59  ;;  %1706 = vmatpush1.bf16.msra.mxu1 %v4195_v60  ;;  %v4285_v59 = vld [vmem:[#allocation3 + $0x1b0] ss:$8 sps:$4 sm:$0xff]  }
  0x62   :  { %1354 = vmatprep.subr.bf16.mxu0 %v4196_v61  ;;  %1707 = vmatprep.subr.bf16.mxu1 %v4198_v62 }
  0x65   :  { %1355 = vmatpush1.bf16.msra.mxu0 %v4200_v63  ;;  %1708 = vmatpush1.bf16.msra.mxu1 %v4201_v0  ;;  %v4286_v0 = vld [vmem:[#allocation3 + $0x1c4] ss:$8 sps:$4 sm:$0xff]  }
  0x68   :  { %1357 = vmatmul.mubr.bf16.vlgmr.msra.gmra.mrb[0].mxu0 %v4202_v1  ;;  %1710 = vmatmul.mubr.bf16.vlgmr.msra.gmra.mrb[0].mxu1 %v4202_v1 }
  0x69   :  { %1366 = vmatprep.mubr.bf16.mxu0 %v4205_v2  ;;  %1719 = vmatprep.mubr.bf16.mxu1 %v4205_v2 }
  0x70   :  { %1367 = vmatmul.mubr.bf16.gmra.mrb[4].mxu0 %v4207_v3  ;;  %1720 = vmatmul.mubr.bf16.gmra.mrb[4].mxu1 %v4207_v3 }
  0x71   :  { %1376 = vmatprep.mubr.bf16.mxu0 %v4208_v4  ;;  %1729 = vmatprep.mubr.bf16.mxu1 %v4208_v4 }
  0x78   :  { %1377 = vmatmul.mubr.bf16.gmra.mrb[8].mxu0 %v4210_v5  ;;  %1730 = vmatmul.mubr.bf16.gmra.mrb[8].mxu1 %v4210_v5 }
  0x79   :  { %1386 = vmatprep.mubr.bf16.mxu0 %v4211_v6  ;;  %1739 = vmatprep.mubr.bf16.mxu1 %v4211_v6 }
  0x80   :  { %1387 = vmatmul.mubr.bf16.gmra.mrb[12].mxu0 %v4213_v7  ;;  %1740 = vmatmul.mubr.bf16.gmra.mrb[12].mxu1 %v4213_v7 }
  0x81   :  { %1396 = vmatprep.mubr.bf16.mxu0 %v4214_v8  ;;  %1749 = vmatprep.mubr.bf16.mxu1 %v4214_v8 }
  0x88   :  { %1397 = vmatmul.mubr.bf16.gmra.mrb[16].mxu0 %v4216_v9  ;;  %1750 = vmatmul.mubr.bf16.gmra.mrb[16].mxu1 %v4216_v9  ;;  %v4288_v9 = vld [vmem:[#allocation3 + $0x1c0] ss:$8 sps:$4 sm:$0xff]  }
  0x89   :  { %1406 = vmatprep.mubr.bf16.mxu0 %v4217_v10  ;;  %1759 = vmatprep.mubr.bf16.mxu1 %v4217_v10 }
  0x90   :  { %1407 = vmatmul.mubr.bf16.gmra.mrb[20].mxu0 %v4219_v11  ;;  %1760 = vmatmul.mubr.bf16.gmra.mrb[20].mxu1 %v4219_v11 }
  0x91   :  { %1416 = vmatprep.mubr.bf16.mxu0 %v4220_v12  ;;  %1769 = vmatprep.mubr.bf16.mxu1 %v4220_v12 }
  0x98   :  { %1417 = vmatmul.mubr.bf16.gmra.mrb[24].mxu0 %v4222_v13  ;;  %1770 = vmatmul.mubr.bf16.gmra.mrb[24].mxu1 %v4222_v13 }
  0x99   :  { %1426 = vmatprep.mubr.bf16.mxu0 %v4223_v14  ;;  %1779 = vmatprep.mubr.bf16.mxu1 %v4223_v14  ;;  %v4289_v14 = vld [vmem:[#allocation3 + $0x1d4] ss:$8 sps:$4 sm:$0xff]  }
  0xa0   :  { %1427 = vmatmul.mubr.bf16.gmra.mrb[28].mxu0 %v4225_v15  ;;  %1780 = vmatmul.mubr.bf16.gmra.mrb[28].mxu1 %v4225_v15 }
  0xa1   :  { %1436 = vmatprep.mubr.bf16.mxu0 %v4226_v16  ;;  %1789 = vmatprep.mubr.bf16.mxu1 %v4226_v16 }
  0xa8   :  { %1437 = vmatmul.mubr.bf16.gmra.mrb[32].mxu0 %v4228_v17  ;;  %1790 = vmatmul.mubr.bf16.gmra.mrb[32].mxu1 %v4228_v17 }
  0xa9   :  { %1446 = vmatprep.mubr.bf16.mxu0 %v4229_v18  ;;  %1799 = vmatprep.mubr.bf16.mxu1 %v4229_v18 }
  0xb0   :  { %1447 = vmatmul.mubr.bf16.gmra.mrb[36].mxu0 %v4231_v19  ;;  %1800 = vmatmul.mubr.bf16.gmra.mrb[36].mxu1 %v4231_v19 }
  0xb1   :  { %1456 = vmatprep.mubr.bf16.mxu0 %v4232_v20  ;;  %1809 = vmatprep.mubr.bf16.mxu1 %v4232_v20 }
  0xb8   :  { %1457 = vmatmul.mubr.bf16.gmra.mrb[40].mxu0 %v4234_v21  ;;  %1810 = vmatmul.mubr.bf16.gmra.mrb[40].mxu1 %v4234_v21 }
  0xb9   :  { %1466 = vmatprep.mubr.bf16.mxu0 %v4235_v22  ;;  %1819 = vmatprep.mubr.bf16.mxu1 %v4235_v22 }
  0xc0   :  { %1467 = vmatmul.mubr.bf16.gmra.mrb[44].mxu0 %v4237_v23  ;;  %1820 = vmatmul.mubr.bf16.gmra.mrb[44].mxu1 %v4237_v23  ;;  %v4291_v23 = vld [vmem:[#allocation3 + $0x1d0] ss:$8 sps:$4 sm:$0xff]  }
  0xc1   :  { %1476 = vmatprep.mubr.bf16.mxu0 %v4238_v24  ;;  %1829 = vmatprep.mubr.bf16.mxu1 %v4238_v24 }
  0xc8   :  { %1477 = vmatmul.mubr.bf16.gmra.mrb[48].mxu0 %v4240_v25  ;;  %1830 = vmatmul.mubr.bf16.gmra.mrb[48].mxu1 %v4240_v25 }
  0xc9   :  { %1486 = vmatprep.mubr.bf16.mxu0 %v4241_v26  ;;  %1839 = vmatprep.mubr.bf16.mxu1 %v4241_v26 }
  0xd0   :  { %1487 = vmatmul.mubr.bf16.gmra.mrb[52].mxu0 %v4243_v27  ;;  %1840 = vmatmul.mubr.bf16.gmra.mrb[52].mxu1 %v4243_v27 }
  0xd1   :  { %1496 = vmatprep.mubr.bf16.mxu0 %v4244_v28  ;;  %1849 = vmatprep.mubr.bf16.mxu1 %v4244_v28  ;;  %v4292_v28 = vld [vmem:[#allocation3 + $0x1e4] ss:$8 sps:$4 sm:$0xff]  }
  0xd8   :  { %1497 = vmatmul.mubr.bf16.gmra.mrb[56].mxu0 %v4246_v29  ;;  %1850 = vmatmul.mubr.bf16.gmra.mrb[56].mxu1 %v4246_v29 }
  0xd9   :  { %1506 = vmatprep.mubr.bf16.mxu0 %v4247_v30  ;;  %1859 = vmatprep.mubr.bf16.mxu1 %v4247_v30 }
  0xe0   :  { %1507 = vmatmul.mubr.bf16.gmra.mrb[60].mxu0 %v4249_v31  ;;  %1860 = vmatmul.mubr.bf16.gmra.mrb[60].mxu1 %v4249_v31 }
  0xe1   :  { %1516 = vmatprep.mubr.bf16.mxu0 %v4250_v32  ;;  %1869 = vmatprep.mubr.bf16.mxu1 %v4250_v32 }
  0xe8   :  { %1517 = vmatmul.mubr.bf16.gmra.mrb[64].mxu0 %v4252_v33  ;;  %1870 = vmatmul.mubr.bf16.gmra.mrb[64].mxu1 %v4252_v33 }
  0xe9   :  { %1526 = vmatprep.mubr.bf16.mxu0 %v4253_v34  ;;  %1879 = vmatprep.mubr.bf16.mxu1 %v4253_v34 }
  0xf0   :  { %1527 = vmatmul.mubr.bf16.gmra.mrb[68].mxu0 %v4255_v35  ;;  %1880 = vmatmul.mubr.bf16.gmra.mrb[68].mxu1 %v4255_v35 }
  0xf1   :  { %1536 = vmatprep.mubr.bf16.mxu0 %v4256_v36  ;;  %1889 = vmatprep.mubr.bf16.mxu1 %v4256_v36 }
  0xf8   :  { %1537 = vmatmul.mubr.bf16.gmra.mrb[72].mxu0 %v4258_v37  ;;  %1890 = vmatmul.mubr.bf16.gmra.mrb[72].mxu1 %v4258_v37  ;;  %v4294_v37 = vld [vmem:[#allocation3 + $0x1e0] ss:$8 sps:$4 sm:$0xff]  }
  0xf9   :  { %1546 = vmatprep.mubr.bf16.mxu0 %v4259_v38  ;;  %1899 = vmatprep.mubr.bf16.mxu1 %v4259_v38 }
 0x100   :  { %1547 = vmatmul.mubr.bf16.gmra.mrb[76].mxu0 %v4261_v39  ;;  %1900 = vmatmul.mubr.bf16.gmra.mrb[76].mxu1 %v4261_v39 }
 0x101   :  { %1556 = vmatprep.mubr.bf16.mxu0 %v4262_v40  ;;  %1909 = vmatprep.mubr.bf16.mxu1 %v4262_v40 }
 0x108   :  { %1557 = vmatmul.mubr.bf16.gmra.mrb[80].mxu0 %v4264_v41  ;;  %1910 = vmatmul.mubr.bf16.gmra.mrb[80].mxu1 %v4264_v41 }
 0x109   :  { %1566 = vmatprep.mubr.bf16.mxu0 %v4265_v42  ;;  %1919 = vmatprep.mubr.bf16.mxu1 %v4265_v42  ;;  %v4295_v42 = vld [vmem:[#allocation3 + $0x1f4] ss:$8 sps:$4 sm:$0xff]  }
 0x110   :  { %1567 = vmatmul.mubr.bf16.gmra.mrb[84].mxu0 %v4267_v43  ;;  %1920 = vmatmul.mubr.bf16.gmra.mrb[84].mxu1 %v4267_v43 }
 0x111   :  { %1576 = vmatprep.mubr.bf16.mxu0 %v4268_v44  ;;  %1929 = vmatprep.mubr.bf16.mxu1 %v4268_v44 }
 0x118   :  { %1577 = vmatmul.mubr.bf16.gmra.mrb[88].mxu0 %v4270_v45  ;;  %1930 = vmatmul.mubr.bf16.gmra.mrb[88].mxu1 %v4270_v45 }
 0x119   :  { %1586 = vmatprep.mubr.bf16.mxu0 %v4271_v46  ;;  %1939 = vmatprep.mubr.bf16.mxu1 %v4271_v46 }
 0x120   :  { %1587 = vmatmul.mubr.bf16.gmra.mrb[92].mxu0 %v4273_v47  ;;  %1940 = vmatmul.mubr.bf16.gmra.mrb[92].mxu1 %v4273_v47 }
 0x121   :  { %1596 = vmatprep.mubr.bf16.mxu0 %v4274_v48  ;;  %1949 = vmatprep.mubr.bf16.mxu1 %v4274_v48 }
 0x128   :  { %1597 = vmatmul.mubr.bf16.gmra.mrb[96].mxu0 %v4276_v49  ;;  %1950 = vmatmul.mubr.bf16.gmra.mrb[96].mxu1 %v4276_v49 }
 0x129   :  { %1606 = vmatprep.mubr.bf16.mxu0 %v4277_v50  ;;  %1959 = vmatprep.mubr.bf16.mxu1 %v4277_v50 }
 0x130   :  { %1607 = vmatmul.mubr.bf16.gmra.mrb[100].mxu0 %v4279_v51  ;;  %1960 = vmatmul.mubr.bf16.gmra.mrb[100].mxu1 %v4279_v51  ;;  %v4297_v51 = vld [vmem:[#allocation3 + $0x1f0] ss:$8 sps:$4 sm:$0xff]  }
 0x131   :  { %1616 = vmatprep.mubr.bf16.mxu0 %v4280_v52  ;;  %1969 = vmatprep.mubr.bf16.mxu1 %v4280_v52 }
 0x138   :  { %1617 = vmatmul.mubr.bf16.gmra.mrb[104].mxu0 %v4282_v53  ;;  %1970 = vmatmul.mubr.bf16.gmra.mrb[104].mxu1 %v4282_v53 }
 0x139   :  { %1626 = vmatprep.mubr.bf16.mxu0 %v4283_v54  ;;  %1979 = vmatprep.mubr.bf16.mxu1 %v4283_v54 }
 0x13b   :  { %v1358_v55 = vpop.f32.mrb[0].mxu0  ;;  %v1711_v56 = vpop.f32.mrb[0].mxu1 }
 0x13c   :  { %v1360_v57 = vpop.f32.mrb[1].mxu0  ;;  %v1713_v58 = vpop.f32.mrb[1].mxu1 }
 0x13d   :  { %v3971_v60 = vpack.c.bf16 %v1360_v57, %v1358_v55  ;;  %v3972_v61 = vpack.c.bf16 %v1713_v58, %v1711_v56  ;;  %v1362_v62 = vpop.f32.mrb[2].mxu0  ;;  %v1715_v63 = vpop.f32.mrb[2].mxu1 }
 0x13e   :  { %v1364_v1 = vpop.f32.mrb[3].mxu0  ;;  %v1717_v2 = vpop.f32.mrb[3].mxu1 }
 0x13f   :  { %3569 = vst [vmem:[#allocation8] sm:$0xff] %v3971_v60  ;;  %3570 = vst [vmem:[#allocation8 + $0x8] sm:$0xff] %v3972_v61  ;;  %v3973_v3 = vpack.c.bf16 %v1364_v1, %v1362_v62  ;;  %v3974_v4 = vpack.c.bf16 %v1717_v2, %v1715_v63 }
 0x140   :  { %1627 = vmatmul.mubr.bf16.gmra.mrb[108].mxu0 %v4285_v59  ;;  %1980 = vmatmul.mubr.bf16.gmra.mrb[108].mxu1 %v4285_v59 }
 0x141   :  { %3571 = vst [vmem:[#allocation8 + $0x10] sm:$0xff] %v3973_v3  ;;  %3572 = vst [vmem:[#allocation8 + $0x18] sm:$0xff] %v3974_v4  ;;  %1636 = vmatprep.mubr.bf16.mxu0 %v4286_v0  ;;  %1989 = vmatprep.mubr.bf16.mxu1 %v4286_v0 }
 0x143   :  { %v1368_v5 = vpop.f32.mrb[4].mxu0  ;;  %v1721_v6 = vpop.f32.mrb[4].mxu1 }
 0x144   :  { %v1370_v7 = vpop.f32.mrb[5].mxu0  ;;  %v1723_v8 = vpop.f32.mrb[5].mxu1 }
 0x145   :  { %v3975_v10 = vpack.c.bf16 %v1370_v7, %v1368_v5  ;;  %v3976_v11 = vpack.c.bf16 %v1723_v8, %v1721_v6  ;;  %v1372_v12 = vpop.f32.mrb[6].mxu0  ;;  %v1725_v13 = vpop.f32.mrb[6].mxu1 }
 0x146   :  { %v1374_v15 = vpop.f32.mrb[7].mxu0  ;;  %v1727_v16 = vpop.f32.mrb[7].mxu1 }
 0x147   :  { %3573 = vst [vmem:[#allocation8 + $0x20] sm:$0xff] %v3975_v10  ;;  %3574 = vst [vmem:[#allocation8 + $0x28] sm:$0xff] %v3976_v11  ;;  %v3977_v17 = vpack.c.bf16 %v1374_v15, %v1372_v12  ;;  %v3978_v18 = vpack.c.bf16 %v1727_v16, %v1725_v13 }
 0x148   :  { %1637 = vmatmul.mubr.bf16.gmra.mrb[112].mxu0 %v4288_v9  ;;  %1990 = vmatmul.mubr.bf16.gmra.mrb[112].mxu1 %v4288_v9 }
 0x149   :  { %3575 = vst [vmem:[#allocation8 + $0x30] sm:$0xff] %v3977_v17  ;;  %3576 = vst [vmem:[#allocation8 + $0x38] sm:$0xff] %v3978_v18  ;;  %1646 = vmatprep.mubr.bf16.mxu0 %v4289_v14  ;;  %1999 = vmatprep.mubr.bf16.mxu1 %v4289_v14 }
 0x14b   :  { %v1378_v19 = vpop.f32.mrb[8].mxu0  ;;  %v1731_v20 = vpop.f32.mrb[8].mxu1 }
 0x14c   :  { %v1380_v21 = vpop.f32.mrb[9].mxu0  ;;  %v1733_v22 = vpop.f32.mrb[9].mxu1 }
 0x14d   :  { %v3979_v24 = vpack.c.bf16 %v1380_v21, %v1378_v19  ;;  %v3980_v25 = vpack.c.bf16 %v1733_v22, %v1731_v20  ;;  %v1382_v26 = vpop.f32.mrb[10].mxu0  ;;  %v1735_v27 = vpop.f32.mrb[10].mxu1 }
 0x14e   :  { %v1384_v29 = vpop.f32.mrb[11].mxu0  ;;  %v1737_v30 = vpop.f32.mrb[11].mxu1 }
 0x14f   :  { %3577 = vst [vmem:[#allocation8 + $0x40] sm:$0xff] %v3979_v24  ;;  %3578 = vst [vmem:[#allocation8 + $0x48] sm:$0xff] %v3980_v25  ;;  %v3981_v31 = vpack.c.bf16 %v1384_v29, %v1382_v26  ;;  %v3982_v32 = vpack.c.bf16 %v1737_v30, %v1735_v27 }
 0x150   :  { %1647 = vmatmul.mubr.bf16.gmra.mrb[116].mxu0 %v4291_v23  ;;  %2000 = vmatmul.mubr.bf16.gmra.mrb[116].mxu1 %v4291_v23 }
 0x151   :  { %3579 = vst [vmem:[#allocation8 + $0x50] sm:$0xff] %v3981_v31  ;;  %3580 = vst [vmem:[#allocation8 + $0x58] sm:$0xff] %v3982_v32  ;;  %1656 = vmatprep.mubr.bf16.mxu0 %v4292_v28  ;;  %2009 = vmatprep.mubr.bf16.mxu1 %v4292_v28 }
 0x153   :  { %v1388_v33 = vpop.f32.mrb[12].mxu0  ;;  %v1741_v34 = vpop.f32.mrb[12].mxu1 }
 0x154   :  { %v1390_v35 = vpop.f32.mrb[13].mxu0  ;;  %v1743_v36 = vpop.f32.mrb[13].mxu1 }
 0x155   :  { %v3983_v38 = vpack.c.bf16 %v1390_v35, %v1388_v33  ;;  %v3984_v39 = vpack.c.bf16 %v1743_v36, %v1741_v34  ;;  %v1392_v40 = vpop.f32.mrb[14].mxu0  ;;  %v1745_v41 = vpop.f32.mrb[14].mxu1 }
 0x156   :  { %v1394_v43 = vpop.f32.mrb[15].mxu0  ;;  %v1747_v44 = vpop.f32.mrb[15].mxu1 }
 0x157   :  { %3581 = vst [vmem:[#allocation8 + $0x60] sm:$0xff] %v3983_v38  ;;  %3582 = vst [vmem:[#allocation8 + $0x68] sm:$0xff] %v3984_v39  ;;  %v3985_v45 = vpack.c.bf16 %v1394_v43, %v1392_v40  ;;  %v3986_v46 = vpack.c.bf16 %v1747_v44, %v1745_v41 }
 0x158   :  { %1657 = vmatmul.mubr.bf16.gmra.mrb[120].mxu0 %v4294_v37  ;;  %2010 = vmatmul.mubr.bf16.gmra.mrb[120].mxu1 %v4294_v37 }
 0x159   :  { %3583 = vst [vmem:[#allocation8 + $0x70] sm:$0xff] %v3985_v45  ;;  %3584 = vst [vmem:[#allocation8 + $0x78] sm:$0xff] %v3986_v46  ;;  %1666 = vmatprep.mubr.bf16.mxu0 %v4295_v42  ;;  %2019 = vmatprep.mubr.bf16.mxu1 %v4295_v42 }
 0x15b   :  { %v1398_v47 = vpop.f32.mrb[16].mxu0  ;;  %v1751_v48 = vpop.f32.mrb[16].mxu1 }
 0x15c   :  { %v1400_v49 = vpop.f32.mrb[17].mxu0  ;;  %v1753_v50 = vpop.f32.mrb[17].mxu1 }
 0x15d   :  { %v3987_v52 = vpack.c.bf16 %v1400_v49, %v1398_v47  ;;  %v3988_v53 = vpack.c.bf16 %v1753_v50, %v1751_v48  ;;  %v1402_v54 = vpop.f32.mrb[18].mxu0  ;;  %v1755_v55 = vpop.f32.mrb[18].mxu1 }
 0x15e   :  { %v1404_v56 = vpop.f32.mrb[19].mxu0  ;;  %v1757_v57 = vpop.f32.mrb[19].mxu1 }
 0x15f   :  { %3585 = vst [vmem:[#allocation8 + $0x80] sm:$0xff] %v3987_v52  ;;  %3586 = vst [vmem:[#allocation8 + $0x88] sm:$0xff] %v3988_v53  ;;  %v3989_v58 = vpack.c.bf16 %v1404_v56, %v1402_v54  ;;  %v3990_v59 = vpack.c.bf16 %v1757_v57, %v1755_v55 }
 0x160   :  { %1667 = vmatmul.mubr.bf16.gmra.mrb[124].mxu0 %v4297_v51  ;;  %2020 = vmatmul.mubr.bf16.gmra.mrb[124].mxu1 %v4297_v51 }
 0x161   :  { %3587 = vst [vmem:[#allocation8 + $0x90] sm:$0xff] %v3989_v58  ;;  %3588 = vst [vmem:[#allocation8 + $0x98] sm:$0xff] %v3990_v59 }
 0x163   :  { %v1408_v60 = vpop.f32.mrb[20].mxu0  ;;  %v1761_v61 = vpop.f32.mrb[20].mxu1 }
 0x164   :  { %v1410_v62 = vpop.f32.mrb[21].mxu0  ;;  %v1763_v63 = vpop.f32.mrb[21].mxu1 }
 0x165   :  { %v3991_v0 = vpack.c.bf16 %v1410_v62, %v1408_v60  ;;  %v3992_v1 = vpack.c.bf16 %v1763_v63, %v1761_v61  ;;  %v1412_v2 = vpop.f32.mrb[22].mxu0  ;;  %v1765_v3 = vpop.f32.mrb[22].mxu1 }
 0x166   :  { %v1414_v4 = vpop.f32.mrb[23].mxu0  ;;  %v1767_v5 = vpop.f32.mrb[23].mxu1 }
 0x167   :  { %3589 = vst [vmem:[#allocation8 + $0xa0] sm:$0xff] %v3991_v0  ;;  %3590 = vst [vmem:[#allocation8 + $0xa8] sm:$0xff] %v3992_v1  ;;  %v3993_v6 = vpack.c.bf16 %v1414_v4, %v1412_v2  ;;  %v3994_v7 = vpack.c.bf16 %v1767_v5, %v1765_v3 }
 0x169   :  { %3591 = vst [vmem:[#allocation8 + $0xb0] sm:$0xff] %v3993_v6  ;;  %3592 = vst [vmem:[#allocation8 + $0xb8] sm:$0xff] %v3994_v7 }
 0x16b   :  { %v1418_v8 = vpop.f32.mrb[24].mxu0  ;;  %v1771_v9 = vpop.f32.mrb[24].mxu1 }
 0x16c   :  { %v1420_v10 = vpop.f32.mrb[25].mxu0  ;;  %v1773_v11 = vpop.f32.mrb[25].mxu1 }
 0x16d   :  { %v3995_v12 = vpack.c.bf16 %v1420_v10, %v1418_v8  ;;  %v3996_v13 = vpack.c.bf16 %v1773_v11, %v1771_v9  ;;  %v1422_v14 = vpop.f32.mrb[26].mxu0  ;;  %v1775_v15 = vpop.f32.mrb[26].mxu1 }
 0x16e   :  { %v1424_v16 = vpop.f32.mrb[27].mxu0  ;;  %v1777_v17 = vpop.f32.mrb[27].mxu1 }
 0x16f   :  { %3593 = vst [vmem:[#allocation8 + $0xc0] sm:$0xff] %v3995_v12  ;;  %3594 = vst [vmem:[#allocation8 + $0xc8] sm:$0xff] %v3996_v13  ;;  %v3997_v18 = vpack.c.bf16 %v1424_v16, %v1422_v14  ;;  %v3998_v19 = vpack.c.bf16 %v1777_v17, %v1775_v15 }
 0x171   :  { %3595 = vst [vmem:[#allocation8 + $0xd0] sm:$0xff] %v3997_v18  ;;  %3596 = vst [vmem:[#allocation8 + $0xd8] sm:$0xff] %v3998_v19 }
 0x173   :  { %v1428_v20 = vpop.f32.mrb[28].mxu0  ;;  %v1781_v21 = vpop.f32.mrb[28].mxu1 }
 0x174   :  { %v1430_v22 = vpop.f32.mrb[29].mxu0  ;;  %v1783_v23 = vpop.f32.mrb[29].mxu1 }
 0x175   :  { %v3999_v24 = vpack.c.bf16 %v1430_v22, %v1428_v20  ;;  %v4000_v25 = vpack.c.bf16 %v1783_v23, %v1781_v21  ;;  %v1432_v26 = vpop.f32.mrb[30].mxu0  ;;  %v1785_v27 = vpop.f32.mrb[30].mxu1 }
 0x176   :  { %v1434_v28 = vpop.f32.mrb[31].mxu0  ;;  %v1787_v29 = vpop.f32.mrb[31].mxu1 }
 0x177   :  { %3597 = vst [vmem:[#allocation8 + $0xe0] sm:$0xff] %v3999_v24  ;;  %3598 = vst [vmem:[#allocation8 + $0xe8] sm:$0xff] %v4000_v25  ;;  %v4001_v30 = vpack.c.bf16 %v1434_v28, %v1432_v26  ;;  %v4002_v31 = vpack.c.bf16 %v1787_v29, %v1785_v27 }
 0x179   :  { %3599 = vst [vmem:[#allocation8 + $0xf0] sm:$0xff] %v4001_v30  ;;  %3600 = vst [vmem:[#allocation8 + $0xf8] sm:$0xff] %v4002_v31 }
 0x17b   :  { %v1438_v32 = vpop.f32.mrb[32].mxu0  ;;  %v1791_v33 = vpop.f32.mrb[32].mxu1 }
 0x17c   :  { %v1440_v34 = vpop.f32.mrb[33].mxu0  ;;  %v1793_v35 = vpop.f32.mrb[33].mxu1 }
 0x17d   :  { %v4003_v36 = vpack.c.bf16 %v1440_v34, %v1438_v32  ;;  %v4004_v37 = vpack.c.bf16 %v1793_v35, %v1791_v33  ;;  %v1442_v38 = vpop.f32.mrb[34].mxu0  ;;  %v1795_v39 = vpop.f32.mrb[34].mxu1 }
 0x17e   :  { %v1444_v40 = vpop.f32.mrb[35].mxu0  ;;  %v1797_v41 = vpop.f32.mrb[35].mxu1 }
 0x17f   :  { %3601 = vst [vmem:[#allocation8 + $0x100] sm:$0xff] %v4003_v36  ;;  %3602 = vst [vmem:[#allocation8 + $0x108] sm:$0xff] %v4004_v37  ;;  %v4005_v42 = vpack.c.bf16 %v1444_v40, %v1442_v38  ;;  %v4006_v43 = vpack.c.bf16 %v1797_v41, %v1795_v39 }
 0x181   :  { %3603 = vst [vmem:[#allocation8 + $0x110] sm:$0xff] %v4005_v42  ;;  %3604 = vst [vmem:[#allocation8 + $0x118] sm:$0xff] %v4006_v43 }
 0x183   :  { %v1448_v44 = vpop.f32.mrb[36].mxu0  ;;  %v1801_v45 = vpop.f32.mrb[36].mxu1 }
 0x184   :  { %v1450_v46 = vpop.f32.mrb[37].mxu0  ;;  %v1803_v47 = vpop.f32.mrb[37].mxu1 }
 0x185   :  { %v4007_v48 = vpack.c.bf16 %v1450_v46, %v1448_v44  ;;  %v4008_v49 = vpack.c.bf16 %v1803_v47, %v1801_v45  ;;  %v1452_v50 = vpop.f32.mrb[38].mxu0  ;;  %v1805_v51 = vpop.f32.mrb[38].mxu1 }
 0x186   :  { %v1454_v52 = vpop.f32.mrb[39].mxu0  ;;  %v1807_v53 = vpop.f32.mrb[39].mxu1 }
 0x187   :  { %3605 = vst [vmem:[#allocation8 + $0x120] sm:$0xff] %v4007_v48  ;;  %3606 = vst [vmem:[#allocation8 + $0x128] sm:$0xff] %v4008_v49  ;;  %v4009_v54 = vpack.c.bf16 %v1454_v52, %v1452_v50  ;;  %v4010_v55 = vpack.c.bf16 %v1807_v53, %v1805_v51 }
 0x189   :  { %3607 = vst [vmem:[#allocation8 + $0x130] sm:$0xff] %v4009_v54  ;;  %3608 = vst [vmem:[#allocation8 + $0x138] sm:$0xff] %v4010_v55 }
 0x18b   :  { %v1458_v56 = vpop.f32.mrb[40].mxu0  ;;  %v1811_v57 = vpop.f32.mrb[40].mxu1 }
 0x18c   :  { %v1460_v58 = vpop.f32.mrb[41].mxu0  ;;  %v1813_v59 = vpop.f32.mrb[41].mxu1 }
 0x18d   :  { %v4011_v60 = vpack.c.bf16 %v1460_v58, %v1458_v56  ;;  %v4012_v61 = vpack.c.bf16 %v1813_v59, %v1811_v57  ;;  %v1462_v62 = vpop.f32.mrb[42].mxu0  ;;  %v1815_v63 = vpop.f32.mrb[42].mxu1 }
 0x18e   :  { %v1464_v0 = vpop.f32.mrb[43].mxu0  ;;  %v1817_v1 = vpop.f32.mrb[43].mxu1 }
 0x18f   :  { %3609 = vst [vmem:[#allocation8 + $0x140] sm:$0xff] %v4011_v60  ;;  %3610 = vst [vmem:[#allocation8 + $0x148] sm:$0xff] %v4012_v61  ;;  %v4013_v2 = vpack.c.bf16 %v1464_v0, %v1462_v62  ;;  %v4014_v3 = vpack.c.bf16 %v1817_v1, %v1815_v63 }
 0x191   :  { %3611 = vst [vmem:[#allocation8 + $0x150] sm:$0xff] %v4013_v2  ;;  %3612 = vst [vmem:[#allocation8 + $0x158] sm:$0xff] %v4014_v3 }
 0x193   :  { %v1468_v4 = vpop.f32.mrb[44].mxu0  ;;  %v1821_v5 = vpop.f32.mrb[44].mxu1 }
 0x194   :  { %v1470_v6 = vpop.f32.mrb[45].mxu0  ;;  %v1823_v7 = vpop.f32.mrb[45].mxu1 }
 0x195   :  { %v4015_v8 = vpack.c.bf16 %v1470_v6, %v1468_v4  ;;  %v4016_v9 = vpack.c.bf16 %v1823_v7, %v1821_v5  ;;  %v1472_v10 = vpop.f32.mrb[46].mxu0  ;;  %v1825_v11 = vpop.f32.mrb[46].mxu1 }
 0x196   :  { %v1474_v12 = vpop.f32.mrb[47].mxu0  ;;  %v1827_v13 = vpop.f32.mrb[47].mxu1 }
 0x197   :  { %3613 = vst [vmem:[#allocation8 + $0x160] sm:$0xff] %v4015_v8  ;;  %3614 = vst [vmem:[#allocation8 + $0x168] sm:$0xff] %v4016_v9  ;;  %v4017_v14 = vpack.c.bf16 %v1474_v12, %v1472_v10  ;;  %v4018_v15 = vpack.c.bf16 %v1827_v13, %v1825_v11 }
 0x199   :  { %3615 = vst [vmem:[#allocation8 + $0x170] sm:$0xff] %v4017_v14  ;;  %3616 = vst [vmem:[#allocation8 + $0x178] sm:$0xff] %v4018_v15 }
 0x19b   :  { %v1478_v16 = vpop.f32.mrb[48].mxu0  ;;  %v1831_v17 = vpop.f32.mrb[48].mxu1 }
 0x19c   :  { %v1480_v18 = vpop.f32.mrb[49].mxu0  ;;  %v1833_v19 = vpop.f32.mrb[49].mxu1 }
 0x19d   :  { %v4019_v20 = vpack.c.bf16 %v1480_v18, %v1478_v16  ;;  %v4020_v21 = vpack.c.bf16 %v1833_v19, %v1831_v17  ;;  %v1482_v22 = vpop.f32.mrb[50].mxu0  ;;  %v1835_v23 = vpop.f32.mrb[50].mxu1 }
 0x19e   :  { %v1484_v24 = vpop.f32.mrb[51].mxu0  ;;  %v1837_v25 = vpop.f32.mrb[51].mxu1 }
 0x19f   :  { %3617 = vst [vmem:[#allocation8 + $0x180] sm:$0xff] %v4019_v20  ;;  %3618 = vst [vmem:[#allocation8 + $0x188] sm:$0xff] %v4020_v21  ;;  %v4021_v26 = vpack.c.bf16 %v1484_v24, %v1482_v22  ;;  %v4022_v27 = vpack.c.bf16 %v1837_v25, %v1835_v23 }
 0x1a1   :  { %3619 = vst [vmem:[#allocation8 + $0x190] sm:$0xff] %v4021_v26  ;;  %3620 = vst [vmem:[#allocation8 + $0x198] sm:$0xff] %v4022_v27 }
 0x1a3   :  { %v1488_v28 = vpop.f32.mrb[52].mxu0  ;;  %v1841_v29 = vpop.f32.mrb[52].mxu1 }
 0x1a4   :  { %v1490_v30 = vpop.f32.mrb[53].mxu0  ;;  %v1843_v31 = vpop.f32.mrb[53].mxu1 }
 0x1a5   :  { %v4023_v32 = vpack.c.bf16 %v1490_v30, %v1488_v28  ;;  %v4024_v33 = vpack.c.bf16 %v1843_v31, %v1841_v29  ;;  %v1492_v34 = vpop.f32.mrb[54].mxu0  ;;  %v1845_v35 = vpop.f32.mrb[54].mxu1 }
 0x1a6   :  { %v1494_v36 = vpop.f32.mrb[55].mxu0  ;;  %v1847_v37 = vpop.f32.mrb[55].mxu1 }
 0x1a7   :  { %3621 = vst [vmem:[#allocation8 + $0x1a0] sm:$0xff] %v4023_v32  ;;  %3622 = vst [vmem:[#allocation8 + $0x1a8] sm:$0xff] %v4024_v33  ;;  %v4025_v38 = vpack.c.bf16 %v1494_v36, %v1492_v34  ;;  %v4026_v39 = vpack.c.bf16 %v1847_v37, %v1845_v35 }
 0x1a9   :  { %3623 = vst [vmem:[#allocation8 + $0x1b0] sm:$0xff] %v4025_v38  ;;  %3624 = vst [vmem:[#allocation8 + $0x1b8] sm:$0xff] %v4026_v39 }
 0x1ab   :  { %v1498_v40 = vpop.f32.mrb[56].mxu0  ;;  %v1851_v41 = vpop.f32.mrb[56].mxu1 }
 0x1ac   :  { %v1500_v42 = vpop.f32.mrb[57].mxu0  ;;  %v1853_v43 = vpop.f32.mrb[57].mxu1 }
 0x1ad   :  { %v4027_v44 = vpack.c.bf16 %v1500_v42, %v1498_v40  ;;  %v4028_v45 = vpack.c.bf16 %v1853_v43, %v1851_v41  ;;  %v1502_v46 = vpop.f32.mrb[58].mxu0  ;;  %v1855_v47 = vpop.f32.mrb[58].mxu1 }
 0x1ae   :  { %v1504_v48 = vpop.f32.mrb[59].mxu0  ;;  %v1857_v49 = vpop.f32.mrb[59].mxu1 }
 0x1af   :  { %3625 = vst [vmem:[#allocation8 + $0x1c0] sm:$0xff] %v4027_v44  ;;  %3626 = vst [vmem:[#allocation8 + $0x1c8] sm:$0xff] %v4028_v45  ;;  %v4029_v50 = vpack.c.bf16 %v1504_v48, %v1502_v46  ;;  %v4030_v51 = vpack.c.bf16 %v1857_v49, %v1855_v47 }
 0x1b1   :  { %3627 = vst [vmem:[#allocation8 + $0x1d0] sm:$0xff] %v4029_v50  ;;  %3628 = vst [vmem:[#allocation8 + $0x1d8] sm:$0xff] %v4030_v51 }
 0x1b3   :  { %v1508_v52 = vpop.f32.mrb[60].mxu0  ;;  %v1861_v53 = vpop.f32.mrb[60].mxu1 }
 0x1b4   :  { %v1510_v54 = vpop.f32.mrb[61].mxu0  ;;  %v1863_v55 = vpop.f32.mrb[61].mxu1 }
 0x1b5   :  { %v4031_v56 = vpack.c.bf16 %v1510_v54, %v1508_v52  ;;  %v4032_v57 = vpack.c.bf16 %v1863_v55, %v1861_v53  ;;  %v1512_v58 = vpop.f32.mrb[62].mxu0  ;;  %v1865_v59 = vpop.f32.mrb[62].mxu1 }
 0x1b6   :  { %v1514_v60 = vpop.f32.mrb[63].mxu0  ;;  %v1867_v61 = vpop.f32.mrb[63].mxu1 }
 0x1b7   :  { %3629 = vst [vmem:[#allocation8 + $0x1e0] sm:$0xff] %v4031_v56  ;;  %3630 = vst [vmem:[#allocation8 + $0x1e8] sm:$0xff] %v4032_v57  ;;  %v4033_v62 = vpack.c.bf16 %v1514_v60, %v1512_v58  ;;  %v4034_v63 = vpack.c.bf16 %v1867_v61, %v1865_v59 }
 0x1b9   :  { %3631 = vst [vmem:[#allocation8 + $0x1f0] sm:$0xff] %v4033_v62  ;;  %3632 = vst [vmem:[#allocation8 + $0x1f8] sm:$0xff] %v4034_v63 }
 0x1bb   :  { %v1518_v0 = vpop.f32.mrb[64].mxu0  ;;  %v1871_v1 = vpop.f32.mrb[64].mxu1 }
 0x1bc   :  { %v1520_v2 = vpop.f32.mrb[65].mxu0  ;;  %v1873_v3 = vpop.f32.mrb[65].mxu1 }
 0x1bd   :  { %v4035_v4 = vpack.c.bf16 %v1520_v2, %v1518_v0  ;;  %v4036_v5 = vpack.c.bf16 %v1873_v3, %v1871_v1  ;;  %v1522_v6 = vpop.f32.mrb[66].mxu0  ;;  %v1875_v7 = vpop.f32.mrb[66].mxu1 }
 0x1be   :  { %v1524_v8 = vpop.f32.mrb[67].mxu0  ;;  %v1877_v9 = vpop.f32.mrb[67].mxu1 }
 0x1bf   :  { %3633 = vst [vmem:[#allocation8 + $0x200] sm:$0xff] %v4035_v4  ;;  %3634 = vst [vmem:[#allocation8 + $0x208] sm:$0xff] %v4036_v5  ;;  %v4037_v10 = vpack.c.bf16 %v1524_v8, %v1522_v6  ;;  %v4038_v11 = vpack.c.bf16 %v1877_v9, %v1875_v7 }
 0x1c1   :  { %3635 = vst [vmem:[#allocation8 + $0x210] sm:$0xff] %v4037_v10  ;;  %3636 = vst [vmem:[#allocation8 + $0x218] sm:$0xff] %v4038_v11 }
 0x1c3   :  { %v1528_v12 = vpop.f32.mrb[68].mxu0  ;;  %v1881_v13 = vpop.f32.mrb[68].mxu1 }
 0x1c4   :  { %v1530_v14 = vpop.f32.mrb[69].mxu0  ;;  %v1883_v15 = vpop.f32.mrb[69].mxu1 }
 0x1c5   :  { %v4039_v16 = vpack.c.bf16 %v1530_v14, %v1528_v12  ;;  %v4040_v17 = vpack.c.bf16 %v1883_v15, %v1881_v13  ;;  %v1532_v18 = vpop.f32.mrb[70].mxu0  ;;  %v1885_v19 = vpop.f32.mrb[70].mxu1 }
 0x1c6   :  { %v1534_v20 = vpop.f32.mrb[71].mxu0  ;;  %v1887_v21 = vpop.f32.mrb[71].mxu1 }
 0x1c7   :  { %3637 = vst [vmem:[#allocation8 + $0x220] sm:$0xff] %v4039_v16  ;;  %3638 = vst [vmem:[#allocation8 + $0x228] sm:$0xff] %v4040_v17  ;;  %v4041_v22 = vpack.c.bf16 %v1534_v20, %v1532_v18  ;;  %v4042_v23 = vpack.c.bf16 %v1887_v21, %v1885_v19 }
 0x1c9   :  { %3639 = vst [vmem:[#allocation8 + $0x230] sm:$0xff] %v4041_v22  ;;  %3640 = vst [vmem:[#allocation8 + $0x238] sm:$0xff] %v4042_v23 }
 0x1cb   :  { %v1538_v24 = vpop.f32.mrb[72].mxu0  ;;  %v1891_v25 = vpop.f32.mrb[72].mxu1 }
 0x1cc   :  { %v1540_v26 = vpop.f32.mrb[73].mxu0  ;;  %v1893_v27 = vpop.f32.mrb[73].mxu1 }
 0x1cd   :  { %v4043_v28 = vpack.c.bf16 %v1540_v26, %v1538_v24  ;;  %v4044_v29 = vpack.c.bf16 %v1893_v27, %v1891_v25  ;;  %v1542_v30 = vpop.f32.mrb[74].mxu0  ;;  %v1895_v31 = vpop.f32.mrb[74].mxu1 }
 0x1ce   :  { %v1544_v32 = vpop.f32.mrb[75].mxu0  ;;  %v1897_v33 = vpop.f32.mrb[75].mxu1 }
 0x1cf   :  { %3641 = vst [vmem:[#allocation8 + $0x240] sm:$0xff] %v4043_v28  ;;  %3642 = vst [vmem:[#allocation8 + $0x248] sm:$0xff] %v4044_v29  ;;  %v4045_v34 = vpack.c.bf16 %v1544_v32, %v1542_v30  ;;  %v4046_v35 = vpack.c.bf16 %v1897_v33, %v1895_v31 }
 0x1d1   :  { %3643 = vst [vmem:[#allocation8 + $0x250] sm:$0xff] %v4045_v34  ;;  %3644 = vst [vmem:[#allocation8 + $0x258] sm:$0xff] %v4046_v35 }
 0x1d3   :  { %v1548_v36 = vpop.f32.mrb[76].mxu0  ;;  %v1901_v37 = vpop.f32.mrb[76].mxu1 }
 0x1d4   :  { %v1550_v38 = vpop.f32.mrb[77].mxu0  ;;  %v1903_v39 = vpop.f32.mrb[77].mxu1 }
 0x1d5   :  { %v4047_v40 = vpack.c.bf16 %v1550_v38, %v1548_v36  ;;  %v4048_v41 = vpack.c.bf16 %v1903_v39, %v1901_v37  ;;  %v1552_v42 = vpop.f32.mrb[78].mxu0  ;;  %v1905_v43 = vpop.f32.mrb[78].mxu1 }
 0x1d6   :  { %v1554_v44 = vpop.f32.mrb[79].mxu0  ;;  %v1907_v45 = vpop.f32.mrb[79].mxu1 }
 0x1d7   :  { %3645 = vst [vmem:[#allocation8 + $0x260] sm:$0xff] %v4047_v40  ;;  %3646 = vst [vmem:[#allocation8 + $0x268] sm:$0xff] %v4048_v41  ;;  %v4049_v46 = vpack.c.bf16 %v1554_v44, %v1552_v42  ;;  %v4050_v47 = vpack.c.bf16 %v1907_v45, %v1905_v43 }
 0x1d9   :  { %3647 = vst [vmem:[#allocation8 + $0x270] sm:$0xff] %v4049_v46  ;;  %3648 = vst [vmem:[#allocation8 + $0x278] sm:$0xff] %v4050_v47 }
 0x1db   :  { %v1558_v48 = vpop.f32.mrb[80].mxu0  ;;  %v1911_v49 = vpop.f32.mrb[80].mxu1 }
 0x1dc   :  { %v1560_v50 = vpop.f32.mrb[81].mxu0  ;;  %v1913_v51 = vpop.f32.mrb[81].mxu1 }
 0x1dd   :  { %v4051_v52 = vpack.c.bf16 %v1560_v50, %v1558_v48  ;;  %v4052_v53 = vpack.c.bf16 %v1913_v51, %v1911_v49  ;;  %v1562_v54 = vpop.f32.mrb[82].mxu0  ;;  %v1915_v55 = vpop.f32.mrb[82].mxu1 }
 0x1de   :  { %v1564_v56 = vpop.f32.mrb[83].mxu0  ;;  %v1917_v57 = vpop.f32.mrb[83].mxu1 }
 0x1df   :  { %3649 = vst [vmem:[#allocation8 + $0x280] sm:$0xff] %v4051_v52  ;;  %3650 = vst [vmem:[#allocation8 + $0x288] sm:$0xff] %v4052_v53  ;;  %v4053_v58 = vpack.c.bf16 %v1564_v56, %v1562_v54  ;;  %v4054_v59 = vpack.c.bf16 %v1917_v57, %v1915_v55 }
 0x1e1   :  { %3651 = vst [vmem:[#allocation8 + $0x290] sm:$0xff] %v4053_v58  ;;  %3652 = vst [vmem:[#allocation8 + $0x298] sm:$0xff] %v4054_v59 }
 0x1e3   :  { %v1568_v60 = vpop.f32.mrb[84].mxu0  ;;  %v1921_v61 = vpop.f32.mrb[84].mxu1 }
 0x1e4   :  { %v1570_v62 = vpop.f32.mrb[85].mxu0  ;;  %v1923_v63 = vpop.f32.mrb[85].mxu1 }
 0x1e5   :  { %v4055_v0 = vpack.c.bf16 %v1570_v62, %v1568_v60  ;;  %v4056_v1 = vpack.c.bf16 %v1923_v63, %v1921_v61  ;;  %v1572_v2 = vpop.f32.mrb[86].mxu0  ;;  %v1925_v3 = vpop.f32.mrb[86].mxu1 }
 0x1e6   :  { %v1574_v4 = vpop.f32.mrb[87].mxu0  ;;  %v1927_v5 = vpop.f32.mrb[87].mxu1 }
 0x1e7   :  { %3653 = vst [vmem:[#allocation8 + $0x2a0] sm:$0xff] %v4055_v0  ;;  %3654 = vst [vmem:[#allocation8 + $0x2a8] sm:$0xff] %v4056_v1  ;;  %v4057_v6 = vpack.c.bf16 %v1574_v4, %v1572_v2  ;;  %v4058_v7 = vpack.c.bf16 %v1927_v5, %v1925_v3 }
 0x1e9   :  { %3655 = vst [vmem:[#allocation8 + $0x2b0] sm:$0xff] %v4057_v6  ;;  %3656 = vst [vmem:[#allocation8 + $0x2b8] sm:$0xff] %v4058_v7 }
 0x1eb   :  { %v1578_v8 = vpop.f32.mrb[88].mxu0  ;;  %v1931_v9 = vpop.f32.mrb[88].mxu1 }
 0x1ec   :  { %v1580_v10 = vpop.f32.mrb[89].mxu0  ;;  %v1933_v11 = vpop.f32.mrb[89].mxu1 }
 0x1ed   :  { %v4059_v12 = vpack.c.bf16 %v1580_v10, %v1578_v8  ;;  %v4060_v13 = vpack.c.bf16 %v1933_v11, %v1931_v9  ;;  %v1582_v14 = vpop.f32.mrb[90].mxu0  ;;  %v1935_v15 = vpop.f32.mrb[90].mxu1 }
 0x1ee   :  { %v1584_v16 = vpop.f32.mrb[91].mxu0  ;;  %v1937_v17 = vpop.f32.mrb[91].mxu1 }
 0x1ef   :  { %3657 = vst [vmem:[#allocation8 + $0x2c0] sm:$0xff] %v4059_v12  ;;  %3658 = vst [vmem:[#allocation8 + $0x2c8] sm:$0xff] %v4060_v13  ;;  %v4061_v18 = vpack.c.bf16 %v1584_v16, %v1582_v14  ;;  %v4062_v19 = vpack.c.bf16 %v1937_v17, %v1935_v15 }
 0x1f1   :  { %3659 = vst [vmem:[#allocation8 + $0x2d0] sm:$0xff] %v4061_v18  ;;  %3660 = vst [vmem:[#allocation8 + $0x2d8] sm:$0xff] %v4062_v19 }
 0x1f3   :  { %v1588_v20 = vpop.f32.mrb[92].mxu0  ;;  %v1941_v21 = vpop.f32.mrb[92].mxu1 }
 0x1f4   :  { %v1590_v22 = vpop.f32.mrb[93].mxu0  ;;  %v1943_v23 = vpop.f32.mrb[93].mxu1 }
 0x1f5   :  { %v4063_v24 = vpack.c.bf16 %v1590_v22, %v1588_v20  ;;  %v4064_v25 = vpack.c.bf16 %v1943_v23, %v1941_v21  ;;  %v1592_v26 = vpop.f32.mrb[94].mxu0  ;;  %v1945_v27 = vpop.f32.mrb[94].mxu1 }
 0x1f6   :  { %v1594_v28 = vpop.f32.mrb[95].mxu0  ;;  %v1947_v29 = vpop.f32.mrb[95].mxu1 }
 0x1f7   :  { %3661 = vst [vmem:[#allocation8 + $0x2e0] sm:$0xff] %v4063_v24  ;;  %3662 = vst [vmem:[#allocation8 + $0x2e8] sm:$0xff] %v4064_v25  ;;  %v4065_v30 = vpack.c.bf16 %v1594_v28, %v1592_v26  ;;  %v4066_v31 = vpack.c.bf16 %v1947_v29, %v1945_v27 }
 0x1f9   :  { %3663 = vst [vmem:[#allocation8 + $0x2f0] sm:$0xff] %v4065_v30  ;;  %3664 = vst [vmem:[#allocation8 + $0x2f8] sm:$0xff] %v4066_v31 }
 0x1fb   :  { %v1598_v32 = vpop.f32.mrb[96].mxu0  ;;  %v1951_v33 = vpop.f32.mrb[96].mxu1 }
 0x1fc   :  { %v1600_v34 = vpop.f32.mrb[97].mxu0  ;;  %v1953_v35 = vpop.f32.mrb[97].mxu1 }
 0x1fd   :  { %v4067_v36 = vpack.c.bf16 %v1600_v34, %v1598_v32  ;;  %v4068_v37 = vpack.c.bf16 %v1953_v35, %v1951_v33  ;;  %v1602_v38 = vpop.f32.mrb[98].mxu0  ;;  %v1955_v39 = vpop.f32.mrb[98].mxu1 }
 0x1fe   :  { %v1604_v40 = vpop.f32.mrb[99].mxu0  ;;  %v1957_v41 = vpop.f32.mrb[99].mxu1 }
 0x1ff   :  { %3665 = vst [vmem:[#allocation8 + $0x300] sm:$0xff] %v4067_v36  ;;  %3666 = vst [vmem:[#allocation8 + $0x308] sm:$0xff] %v4068_v37  ;;  %v4069_v42 = vpack.c.bf16 %v1604_v40, %v1602_v38  ;;  %v4070_v43 = vpack.c.bf16 %v1957_v41, %v1955_v39 }
 0x201   :  { %3667 = vst [vmem:[#allocation8 + $0x310] sm:$0xff] %v4069_v42  ;;  %3668 = vst [vmem:[#allocation8 + $0x318] sm:$0xff] %v4070_v43 }
 0x203   :  { %v1608_v44 = vpop.f32.mrb[100].mxu0  ;;  %v1961_v45 = vpop.f32.mrb[100].mxu1 }
 0x204   :  { %v1610_v46 = vpop.f32.mrb[101].mxu0  ;;  %v1963_v47 = vpop.f32.mrb[101].mxu1 }
 0x205   :  { %v4071_v48 = vpack.c.bf16 %v1610_v46, %v1608_v44  ;;  %v4072_v49 = vpack.c.bf16 %v1963_v47, %v1961_v45  ;;  %v1612_v50 = vpop.f32.mrb[102].mxu0  ;;  %v1965_v51 = vpop.f32.mrb[102].mxu1 }
 0x206   :  { %v1614_v52 = vpop.f32.mrb[103].mxu0  ;;  %v1967_v53 = vpop.f32.mrb[103].mxu1 }
 0x207   :  { %3669 = vst [vmem:[#allocation8 + $0x320] sm:$0xff] %v4071_v48  ;;  %3670 = vst [vmem:[#allocation8 + $0x328] sm:$0xff] %v4072_v49  ;;  %v4073_v54 = vpack.c.bf16 %v1614_v52, %v1612_v50  ;;  %v4074_v55 = vpack.c.bf16 %v1967_v53, %v1965_v51 }
 0x209   :  { %3671 = vst [vmem:[#allocation8 + $0x330] sm:$0xff] %v4073_v54  ;;  %3672 = vst [vmem:[#allocation8 + $0x338] sm:$0xff] %v4074_v55 }
 0x20b   :  { %v1618_v56 = vpop.f32.mrb[104].mxu0  ;;  %v1971_v57 = vpop.f32.mrb[104].mxu1 }
 0x20c   :  { %v1620_v58 = vpop.f32.mrb[105].mxu0  ;;  %v1973_v59 = vpop.f32.mrb[105].mxu1 }
 0x20d   :  { %v4075_v60 = vpack.c.bf16 %v1620_v58, %v1618_v56  ;;  %v4076_v61 = vpack.c.bf16 %v1973_v59, %v1971_v57  ;;  %v1622_v62 = vpop.f32.mrb[106].mxu0  ;;  %v1975_v63 = vpop.f32.mrb[106].mxu1 }
 0x20e   :  { %v1624_v0 = vpop.f32.mrb[107].mxu0  ;;  %v1977_v1 = vpop.f32.mrb[107].mxu1 }
 0x20f   :  { %3673 = vst [vmem:[#allocation8 + $0x340] sm:$0xff] %v4075_v60  ;;  %3674 = vst [vmem:[#allocation8 + $0x348] sm:$0xff] %v4076_v61  ;;  %v4077_v2 = vpack.c.bf16 %v1624_v0, %v1622_v62  ;;  %v4078_v3 = vpack.c.bf16 %v1977_v1, %v1975_v63 }
 0x211   :  { %3675 = vst [vmem:[#allocation8 + $0x350] sm:$0xff] %v4077_v2  ;;  %3676 = vst [vmem:[#allocation8 + $0x358] sm:$0xff] %v4078_v3 }
 0x213   :  { %v1628_v4 = vpop.f32.mrb[108].mxu0  ;;  %v1981_v5 = vpop.f32.mrb[108].mxu1 }
 0x214   :  { %v1630_v6 = vpop.f32.mrb[109].mxu0  ;;  %v1983_v7 = vpop.f32.mrb[109].mxu1 }
 0x215   :  { %v4079_v8 = vpack.c.bf16 %v1630_v6, %v1628_v4  ;;  %v4080_v9 = vpack.c.bf16 %v1983_v7, %v1981_v5  ;;  %v1632_v10 = vpop.f32.mrb[110].mxu0  ;;  %v1985_v11 = vpop.f32.mrb[110].mxu1 }
 0x216   :  { %v1634_v12 = vpop.f32.mrb[111].mxu0  ;;  %v1987_v13 = vpop.f32.mrb[111].mxu1 }
 0x217   :  { %3677 = vst [vmem:[#allocation8 + $0x360] sm:$0xff] %v4079_v8  ;;  %3678 = vst [vmem:[#allocation8 + $0x368] sm:$0xff] %v4080_v9  ;;  %v4081_v14 = vpack.c.bf16 %v1634_v12, %v1632_v10  ;;  %v4082_v15 = vpack.c.bf16 %v1987_v13, %v1985_v11 }
 0x219   :  { %3679 = vst [vmem:[#allocation8 + $0x370] sm:$0xff] %v4081_v14  ;;  %3680 = vst [vmem:[#allocation8 + $0x378] sm:$0xff] %v4082_v15 }
 0x21b   :  { %v1638_v16 = vpop.f32.mrb[112].mxu0  ;;  %v1991_v17 = vpop.f32.mrb[112].mxu1 }
 0x21c   :  { %v1640_v18 = vpop.f32.mrb[113].mxu0  ;;  %v1993_v19 = vpop.f32.mrb[113].mxu1 }
 0x21d   :  { %v4083_v20 = vpack.c.bf16 %v1640_v18, %v1638_v16  ;;  %v4084_v21 = vpack.c.bf16 %v1993_v19, %v1991_v17  ;;  %v1642_v22 = vpop.f32.mrb[114].mxu0  ;;  %v1995_v23 = vpop.f32.mrb[114].mxu1 }
 0x21e   :  { %v1644_v24 = vpop.f32.mrb[115].mxu0  ;;  %v1997_v25 = vpop.f32.mrb[115].mxu1 }
 0x21f   :  { %3681 = vst [vmem:[#allocation8 + $0x380] sm:$0xff] %v4083_v20  ;;  %3682 = vst [vmem:[#allocation8 + $0x388] sm:$0xff] %v4084_v21  ;;  %v4085_v26 = vpack.c.bf16 %v1644_v24, %v1642_v22  ;;  %v4086_v27 = vpack.c.bf16 %v1997_v25, %v1995_v23 }
 0x221   :  { %3683 = vst [vmem:[#allocation8 + $0x390] sm:$0xff] %v4085_v26  ;;  %3684 = vst [vmem:[#allocation8 + $0x398] sm:$0xff] %v4086_v27 }
 0x223   :  { %v1648_v28 = vpop.f32.mrb[116].mxu0  ;;  %v2001_v29 = vpop.f32.mrb[116].mxu1 }
 0x224   :  { %v1650_v30 = vpop.f32.mrb[117].mxu0  ;;  %v2003_v31 = vpop.f32.mrb[117].mxu1 }
 0x225   :  { %v4087_v32 = vpack.c.bf16 %v1650_v30, %v1648_v28  ;;  %v4088_v33 = vpack.c.bf16 %v2003_v31, %v2001_v29  ;;  %v1652_v34 = vpop.f32.mrb[118].mxu0  ;;  %v2005_v35 = vpop.f32.mrb[118].mxu1 }
 0x226   :  { %v1654_v36 = vpop.f32.mrb[119].mxu0  ;;  %v2007_v37 = vpop.f32.mrb[119].mxu1 }
 0x227   :  { %3685 = vst [vmem:[#allocation8 + $0x3a0] sm:$0xff] %v4087_v32  ;;  %3686 = vst [vmem:[#allocation8 + $0x3a8] sm:$0xff] %v4088_v33  ;;  %v4089_v38 = vpack.c.bf16 %v1654_v36, %v1652_v34  ;;  %v4090_v39 = vpack.c.bf16 %v2007_v37, %v2005_v35 }
 0x229   :  { %3687 = vst [vmem:[#allocation8 + $0x3b0] sm:$0xff] %v4089_v38  ;;  %3688 = vst [vmem:[#allocation8 + $0x3b8] sm:$0xff] %v4090_v39 }
 0x22b   :  { %v1658_v40 = vpop.f32.mrb[120].mxu0  ;;  %v2011_v41 = vpop.f32.mrb[120].mxu1 }
 0x22c   :  { %v1660_v42 = vpop.f32.mrb[121].mxu0  ;;  %v2013_v43 = vpop.f32.mrb[121].mxu1 }
 0x22d   :  { %v4091_v44 = vpack.c.bf16 %v1660_v42, %v1658_v40  ;;  %v4092_v45 = vpack.c.bf16 %v2013_v43, %v2011_v41  ;;  %v1662_v46 = vpop.f32.mrb[122].mxu0  ;;  %v2015_v47 = vpop.f32.mrb[122].mxu1 }
 0x22e   :  { %v1664_v48 = vpop.f32.mrb[123].mxu0  ;;  %v2017_v49 = vpop.f32.mrb[123].mxu1 }
 0x22f   :  { %3689 = vst [vmem:[#allocation8 + $0x3c0] sm:$0xff] %v4091_v44  ;;  %3690 = vst [vmem:[#allocation8 + $0x3c8] sm:$0xff] %v4092_v45  ;;  %v4093_v50 = vpack.c.bf16 %v1664_v48, %v1662_v46  ;;  %v4094_v51 = vpack.c.bf16 %v2017_v49, %v2015_v47 }
 0x231   :  { %3691 = vst [vmem:[#allocation8 + $0x3d0] sm:$0xff] %v4093_v50  ;;  %3692 = vst [vmem:[#allocation8 + $0x3d8] sm:$0xff] %v4094_v51 }
 0x233   :  { %v1668_v52 = vpop.f32.mrb[124].mxu0  ;;  %v2021_v53 = vpop.f32.mrb[124].mxu1 }
 0x234   :  { %v1670_v54 = vpop.f32.mrb[125].mxu0  ;;  %v2023_v55 = vpop.f32.mrb[125].mxu1 }
 0x235   :  { %v4095_v56 = vpack.c.bf16 %v1670_v54, %v1668_v52  ;;  %v4096_v57 = vpack.c.bf16 %v2023_v55, %v2021_v53  ;;  %v1672_v58 = vpop.f32.mrb[126].mxu0  ;;  %v2025_v59 = vpop.f32.mrb[126].mxu1 }
 0x236   :  { %v1674_v60 = vpop.f32.mrb[127].mxu0  ;;  %v2027_v61 = vpop.f32.mrb[127].mxu1 }
 0x237   :  { %3693 = vst [vmem:[#allocation8 + $0x3e0] sm:$0xff] %v4095_v56  ;;  %3694 = vst [vmem:[#allocation8 + $0x3e8] sm:$0xff] %v4096_v57  ;;  %v4097_v62 = vpack.c.bf16 %v1674_v60, %v1672_v58  ;;  %v4098_v63 = vpack.c.bf16 %v2027_v61, %v2025_v59 }
 0x239   :  { %3695 = vst [vmem:[#allocation8 + $0x3f0] sm:$0xff] %v4097_v62  ;;  %3696 = vst [vmem:[#allocation8 + $0x3f8] sm:$0xff] %v4098_v63 }
 0x23a   :  { %4353 = shalt.err (!%p4350_p6)
}
 0x23b   :  { %s4354_s12 = scalar_lea.hbm %s4436_s2, 16384 }
 0x23c   :  { %p4355_p7 = scmp.ne.s32.totalorder %s4436_s2, %s4354_s12  ;;  %p4358_p8 = scmp.lt.u32.totalorder %s4354_s12, %s4436_s2 }
 0x23e   :  { %p4360_p9 = pnand %p4358_p8, %p4355_p7 }
 0x240   :  { %4363 = shalt.err (!%p4360_p9)
}
 0x241   :  { %3708 = dma.vmem_to_hbm [thread:$0]  %s3703_s8, 16384, %s4436_s2, [#allocation5], %s4374_s0, %s4374_s0, %s4375_s5  }
 0x242   :  { %4368 = dma.done.wait [#allocation5], 16384  }
 0x243   :  { %4369 = vsyncadd [#allocation5], 4294950912 }
 0x244   :  { %3712 = vsyncpa [#allocation4], 1 }
 0x245   :  { %3713 = vsyncpa [#allocation7], 1 }
 0x246   :  { %3714 = vsyncpa [#allocation5], 1 }

</bundles_post_ra>
